<compile_context>
chip_gen: v7x
topology: tpu7x:2x2x1
jax: 0.10.0
libtpu: 0.0.40
codegen_flags: <defaults>
</compile_context>

<pallas_src>
import jax
import jax.numpy as jnp
from jax.experimental import pallas as pl
from jax.experimental.pallas import tpu as pltpu


IN_FEATURES = 28 * 28        # 784
K_PAD = 896                  # 784 padded up to a multiple of 128 (lane-clean K)
BIAS_COL = IN_FEATURES       # padding column of x that carries the folded b1's 1.0
H = 512                      # hidden width
N_OUT = 10
N_PAD = 128                  # 10 padded up to lane width 128 (lane-dense output)


def mlp_kernel(x_ref, w1_ref, w2_ref, b2_ref, w3_ref, b3_ref, out_ref):
    # Three MXU matmuls on bf16 operands with f32 accumulation; elementwise work
    # (bias add, ReLU) stays in f32 on the accumulator (v5e VPU has no bf16).
    x = x_ref[...]                                               # bf16 [MB, K_PAD]

    # Layer 1: b1 is folded into row BIAS_COL of w1 (x has 1.0 in that column).
    h1 = jnp.dot(x, w1_ref[...], preferred_element_type=jnp.float32)
    h1 = jnp.maximum(h1, 0.0)                                    # f32 [MB, H]

    h2 = jnp.dot(h1.astype(jnp.bfloat16), w2_ref[...],
                 preferred_element_type=jnp.float32)
    h2 = jnp.maximum(h2 + b2_ref[...], 0.0)                      # f32 [MB, H]

    logits = jnp.dot(h2.astype(jnp.bfloat16), w3_ref[...],
                     preferred_element_type=jnp.float32) + b3_ref[...]
    out_ref[...] = logits.astype(out_ref.dtype)                  # f32 [MB, N_PAD]


def prepare_params(params):
    """One-time prep: pad, fold b1 into w1's padding rows, cast weights to bf16.

    Returns a tuple of device arrays to be reused across every forward call so
    the per-call wrapper does no weight padding / casting traffic.
    """
    w1, b1, w2, b2, w3, b3 = params
    w1_p = jnp.zeros((K_PAD, H), jnp.float32)
    w1_p = w1_p.at[:IN_FEATURES, :].set(w1)
    w1_p = w1_p.at[BIAS_COL, :].set(b1)          # bias folded into padded K row
    w3_p = jnp.zeros((H, N_PAD), jnp.float32).at[:, :N_OUT].set(w3)
    b3_p = jnp.zeros((N_PAD,), jnp.float32).at[:N_OUT].set(b3)

    return (
        w1_p.astype(jnp.bfloat16),               # [K_PAD, H]
        w2.astype(jnp.bfloat16),                 # [H, H]
        b2.reshape(1, -1).astype(jnp.float32),   # [1, H]
        w3_p.astype(jnp.bfloat16),               # [H, N_PAD]
        b3_p.reshape(1, -1).astype(jnp.float32), # [1, N_PAD]
    )


def _pick_batch_tile(batch):
    """Rows per grid step.

    bf16 packed sublane tile is (16, 128) -> minimum 16 rows. At large batch use
    big tiles (<=512 rows, ~6 MB VMEM incl. double-buffered x/out) to amortize the
    ~0.35us per-grid-step overhead, but keep >= 2 grid steps so the "parallel"
    batch axis can be sharded across v7x's two TensorCores.
    """
    if batch <= 256:
        return max(16, -(-batch // 16) * 16)
    half = -(-batch // 2)                        # ceil(batch / 2)
    return min(512, -(-half // 128) * 128)       # half-batch rounded up to 128


@jax.jit
def neural_network_forward(x, prepared):
    """x: [B, 1, 28, 28] or [B, 28, 28]; prepared = prepare_params(params).

    Returns logits [B, 10].
    """
    w1_bf, w2_bf, b2_2d, w3_bf, b3_2d = prepared
    batch = x.shape[0]

    mb = _pick_batch_tile(batch)
    b_pad = -(-batch // mb) * mb
    grid = (b_pad // mb,)

    # ---- fused input prep: one bf16 pass (flatten -> cast -> bias column -> pad)
    x_flat = x.reshape(batch, -1).astype(jnp.bfloat16)           # nn.Flatten()
    assert x_flat.shape[1] == IN_FEATURES
    ones = jnp.ones((batch, 1), jnp.bfloat16)                    # carries folded b1
    x_p = jnp.concatenate([x_flat, ones], axis=1)                # [batch, 785]
    x_p = jnp.pad(x_p, ((0, b_pad - batch), (0, K_PAD - IN_FEATURES - 1)))

    flops = 2 * b_pad * (K_PAD * H + H * H + H * N_PAD)
    bytes_accessed = (
        b_pad * K_PAD * 2                                        # x (bf16)
        + (w1_bf.size + w2_bf.size + w3_bf.size) * 2             # weights (bf16)
        + (b2_2d.size + b3_2d.size) * 4                          # biases (f32)
        + b_pad * N_PAD * 4                                      # out (f32)
    )

    out = pl.pallas_call(
        mlp_kernel,
        out_shape=jax.ShapeDtypeStruct((b_pad, N_PAD), jnp.float32),
        grid_spec=pltpu.PrefetchScalarGridSpec(
            num_scalar_prefetch=0,
            grid=grid,
            in_specs=[
                pl.BlockSpec((mb, K_PAD), lambda i: (i, 0)),     # x tile
                # Constant block index -> fetched once, VMEM-resident thereafter.
                pl.BlockSpec((K_PAD, H), lambda i: (0, 0)),      # w1 (b1 folded in)
                pl.BlockSpec((H, H), lambda i: (0, 0)),          # w2
                pl.BlockSpec((1, H), lambda i: (0, 0)),          # b2
                pl.BlockSpec((H, N_PAD), lambda i: (0, 0)),      # w3 (lane-padded)
                pl.BlockSpec((1, N_PAD), lambda i: (0, 0)),      # b3
            ],
            out_specs=pl.BlockSpec((mb, N_PAD), lambda i: (i, 0)),
        ),
        compiler_params=pltpu.CompilerParams(
            dimension_semantics=("parallel",),
        ),
        cost_estimate=pl.CostEstimate(
            flops=flops, transcendentals=0, bytes_accessed=bytes_accessed),
    )(x_p, w1_bf, w2_bf, b2_2d, w3_bf, b3_2d)

    return out[:batch, :N_OUT]


def init_params(key):
    """Deterministic init matching nn.Linear shapes: U(-1/sqrt(fan_in), 1/sqrt(fan_in))."""
    def linear(key, fan_in, fan_out):
        kw, kb = jax.random.split(key)
        bound = 1.0 / jnp.sqrt(fan_in)
        # Stored as [in, out] so the kernel computes x @ W (== torch's x @ W.T).
        w = jax.random.uniform(kw, (fan_in, fan_out), jnp.float32, -bound, bound)
        b = jax.random.uniform(kb, (fan_out,), jnp.float32, -bound, bound)
        return w, b

    k1, k2, k3 = jax.random.split(key, 3)
    w1, b1 = linear(k1, IN_FEATURES, H)
    w2, b2 = linear(k2, H, H)
    w3, b3 = linear(k3, H, N_OUT)
    return (w1, b1, w2, b2, w3, b3)


def reference_forward(x, params):
    w1, b1, w2, b2, w3, b3 = params
    xf = x.reshape(x.shape[0], -1)
    h1 = jnp.maximum(xf @ w1 + b1, 0.0)
    h2 = jnp.maximum(h1 @ w2 + b2, 0.0)
    return h2 @ w3 + b3


if __name__ == "__main__":
    key = jax.random.PRNGKey(0)
    k_params, k_x = jax.random.split(key)

    params = init_params(k_params)
    prepared = prepare_params(params)       # one-time pad + bf16 cast, cached

    # Small MNIST-like batch: [batch=8, channels=1, 28, 28]
    x = jax.random.normal(k_x, (8, 1, 28, 28), dtype=jnp.float32)

    logits = neural_network_forward(x, prepared)
    logits = jax.block_until_ready(logits)

    ref = reference_forward(x, params)
    assert logits.shape == (8, 10)
    # bf16 matmul inputs (f32 accumulate) vs. pure-f32 reference: relaxed tolerance.
    assert jnp.allclose(logits, ref, atol=5e-2, rtol=5e-2)

    print("KERNEL_OK")
</pallas_src>

<mosaic_0001>
module attributes {stable_mosaic.version = 11 : i64} {
  func.func @mlp_kernel(%arg0: i32, %arg1: memref<16x896xbf16, #tpu.memory_space<vmem>>, %arg2: memref<896x512xbf16, #tpu.memory_space<vmem>>, %arg3: memref<512x512xbf16, #tpu.memory_space<vmem>>, %arg4: memref<1x512xf32, #tpu.memory_space<vmem>>, %arg5: memref<512x128xbf16, #tpu.memory_space<vmem>>, %arg6: memref<1x128xf32, #tpu.memory_space<vmem>>, %arg7: memref<16x128xf32, #tpu.memory_space<vmem>>) attributes {dimension_semantics = [#tpu.dimension_semantics<parallel>], iteration_bounds = array<i64: 1>, scalar_prefetch = 0 : i64, scratch_operands = 0 : i64, tpu.core_type = #tpu.core_type<tc>, window_params = [{transform_indices = @transform_0, window_bounds = array<i64: 16, 896>}, {pipeline_mode = #tpu.pipeline_mode<synchronous>, transform_indices = @transform_1, window_bounds = array<i64: 896, 512>}, {pipeline_mode = #tpu.pipeline_mode<synchronous>, transform_indices = @transform_2, window_bounds = array<i64: 512, 512>}, {pipeline_mode = #tpu.pipeline_mode<synchronous>, transform_indices = @transform_3, window_bounds = array<i64: 1, 512>}, {pipeline_mode = #tpu.pipeline_mode<synchronous>, transform_indices = @transform_4, window_bounds = array<i64: 512, 128>}, {pipeline_mode = #tpu.pipeline_mode<synchronous>, transform_indices = @transform_5, window_bounds = array<i64: 1, 128>}, {transform_indices = @transform_6, window_bounds = array<i64: 16, 128>}]} {
    %c0 = arith.constant 0 : index
    %c0_0 = arith.constant 0 : index
    %0 = vector.load %arg1[%c0, %c0_0] : memref<16x896xbf16, #tpu.memory_space<vmem>>, vector<16x896xbf16>
    %c0_1 = arith.constant 0 : index
    %c0_2 = arith.constant 0 : index
    %1 = vector.load %arg2[%c0_1, %c0_2] : memref<896x512xbf16, #tpu.memory_space<vmem>>, vector<896x512xbf16>
    %cst = arith.constant dense<0.000000e+00> : vector<16x512xf32>
    %2 = tpu.matmul %0, %1, %cst {dimension_numbers = #tpu.dot_dimension_numbers<[1], [0], [0], [1], [0, 0, 1, 1], [], []>} : vector<16x896xbf16>, vector<896x512xbf16>, vector<16x512xf32> -> vector<16x512xf32>
    %cst_3 = arith.constant 0.000000e+00 : f32
    %3 = vector.broadcast %cst_3 : f32 to vector<16x512xf32>
    %4 = arith.maximumf %2, %3 : vector<16x512xf32>
    %5 = arith.truncf %4 : vector<16x512xf32> to vector<16x512xbf16>
    %c0_4 = arith.constant 0 : index
    %c0_5 = arith.constant 0 : index
    %6 = vector.load %arg3[%c0_4, %c0_5] : memref<512x512xbf16, #tpu.memory_space<vmem>>, vector<512x512xbf16>
    %cst_6 = arith.constant dense<0.000000e+00> : vector<16x512xf32>
    %7 = tpu.matmul %5, %6, %cst_6 {dimension_numbers = #tpu.dot_dimension_numbers<[1], [0], [0], [1], [0, 0, 1, 1], [], []>} : vector<16x512xbf16>, vector<512x512xbf16>, vector<16x512xf32> -> vector<16x512xf32>
    %c0_7 = arith.constant 0 : index
    %c0_8 = arith.constant 0 : index
    %8 = vector.load %arg4[%c0_7, %c0_8] : memref<1x512xf32, #tpu.memory_space<vmem>>, vector<1x512xf32>
    %9 = vector.broadcast %8 : vector<1x512xf32> to vector<16x512xf32>
    %10 = arith.addf %7, %9 : vector<16x512xf32>
    %cst_9 = arith.constant 0.000000e+00 : f32
    %11 = vector.broadcast %cst_9 : f32 to vector<16x512xf32>
    %12 = arith.maximumf %10, %11 : vector<16x512xf32>
    %13 = arith.truncf %12 : vector<16x512xf32> to vector<16x512xbf16>
    %c0_10 = arith.constant 0 : index
    %c0_11 = arith.constant 0 : index
    %14 = vector.load %arg5[%c0_10, %c0_11] : memref<512x128xbf16, #tpu.memory_space<vmem>>, vector<512x128xbf16>
    %cst_12 = arith.constant dense<0.000000e+00> : vector<16x128xf32>
    %15 = tpu.matmul %13, %14, %cst_12 {dimension_numbers = #tpu.dot_dimension_numbers<[1], [0], [0], [1], [0, 0, 1, 1], [], []>} : vector<16x512xbf16>, vector<512x128xbf16>, vector<16x128xf32> -> vector<16x128xf32>
    %c0_13 = arith.constant 0 : index
    %c0_14 = arith.constant 0 : index
    %16 = vector.load %arg6[%c0_13, %c0_14] : memref<1x128xf32, #tpu.memory_space<vmem>>, vector<1x128xf32>
    %17 = vector.broadcast %16 : vector<1x128xf32> to vector<16x128xf32>
    %18 = arith.addf %15, %17 : vector<16x128xf32>
    %c0_15 = arith.constant 0 : index
    %c0_16 = arith.constant 0 : index
    %19 = vector.load %arg7[%c0_15, %c0_16] : memref<16x128xf32, #tpu.memory_space<vmem>>, vector<16x128xf32>
    tpu.vector_store %arg7[%c0_15, %c0_16], %18 {strides = array<i32>} : memref<16x128xf32, #tpu.memory_space<vmem>>, vector<16x128xf32>,
    return
  }
  func.func @transform_0(%arg0: i32) -> (i32, i32) {
    %c0_i32 = arith.constant 0 : i32
    %c0_i32_0 = arith.constant 0 : i32
    return %arg0, %c0_i32 : i32, i32
  }
  func.func @transform_1(%arg0: i32) -> (i32, i32) {
    %c0_i32 = arith.constant 0 : i32
    %c0_i32_0 = arith.constant 0 : i32
    %c0_i32_1 = arith.constant 0 : i32
    return %c0_i32, %c0_i32_0 : i32, i32
  }
  func.func @transform_2(%arg0: i32) -> (i32, i32) {
    %c0_i32 = arith.constant 0 : i32
    %c0_i32_0 = arith.constant 0 : i32
    %c0_i32_1 = arith.constant 0 : i32
    return %c0_i32, %c0_i32_0 : i32, i32
  }
  func.func @transform_3(%arg0: i32) -> (i32, i32) {
    %c0_i32 = arith.constant 0 : i32
    %c0_i32_0 = arith.constant 0 : i32
    %c0_i32_1 = arith.constant 0 : i32
    return %c0_i32, %c0_i32_0 : i32, i32
  }
  func.func @transform_4(%arg0: i32) -> (i32, i32) {
    %c0_i32 = arith.constant 0 : i32
    %c0_i32_0 = arith.constant 0 : i32
    %c0_i32_1 = arith.constant 0 : i32
    return %c0_i32, %c0_i32_0 : i32, i32
  }
  func.func @transform_5(%arg0: i32) -> (i32, i32) {
    %c0_i32 = arith.constant 0 : i32
    %c0_i32_0 = arith.constant 0 : i32
    %c0_i32_1 = arith.constant 0 : i32
    return %c0_i32, %c0_i32_0 : i32, i32
  }
  func.func @transform_6(%arg0: i32) -> (i32, i32) {
    %c0_i32 = arith.constant 0 : i32
    %c0_i32_0 = arith.constant 0 : i32
    return %arg0, %c0_i32 : i32, i32
  }
}

</mosaic_0001>

<bundles_post_ra>
// kernel: neural_network_forward.1
= control target key start
LH: loop header
LB: loop body
LE: loop exit
PB: predicated region body
PF: predicated region fallthrough
CT: control target
= control target key end

     0   :  { %11 = vsyncpa [#allocation3], 0  ;;  %s4419_s0 = inlined_call_operand.vmem [shape: bf16[16,896], index: 0, kind: input, shape index: {}]   ;;  %s4420_s1 = inlined_call_operand.hbm [shape: bf16[896,512], index: 1, kind: input, shape index: {}]   ;;  %s4421_s2 = inlined_call_operand.hbm [shape: bf16[512,512], index: 2, kind: input, shape index: {}]   ;;  %s4422_s3 = inlined_call_operand.vmem [shape: f32[1,512], index: 3, kind: input, shape index: {}]   ;;  %s4423_s4 = inlined_call_operand.vmem [shape: bf16[512,128], index: 4, kind: input, shape index: {}]   ;;  %s4424_s5 = inlined_call_operand.vmem [shape: f32[1,128], index: 5, kind: input, shape index: {}]   ;;  %s4425_s6 = inlined_call_operand.vmem [shape: f32[16,128], index: 6, kind: output, shape index: {}]  }
   0x1   :  { %12 = vsyncpa [#allocation5], 0  ;;  %s4222_s21 = smov [#allocation2]   ;;  %s4174_s25 = scalar_lea.hbm %s4420_s1, 28672 }
   0x2   :  { %s20_s22 = sshll.u32 %s4222_s21, 4  ;;  %p4175_p0 = scmp.ne.s32.totalorder %s4420_s1, %s4174_s25  ;;  %s21_s22 = int_to_ptr.vmem [resolvable:$true] %s20_s22 }
   0x3   :  { %p4178_p1 = scmp.lt.u32.totalorder %s4174_s25, %s4420_s1 }
   0x5   :  { %p4180_p2 = pnand %p4178_p1, %p4175_p0 }
   0x7   :  { %4183 = shalt.err (!%p4180_p2)
}
   0x8   :  { %s4184_s30 = scalar_lea.vmem %s21_s22, 28672  ;;  %p4189_p4 = scmp.lt.s32.totalorder %s21_s22, %s21_s22 }
   0x9   :  { %p4185_p3 = scmp.ne.s32.totalorder %s21_s22, %s4184_s30  ;;  %p4190_p5 = scmp.lt.s32.totalorder %s4184_s30, %s4184_s30 }
   0xb   :  { %p4191_p6 = por %p4190_p5, %p4189_p4 }
   0xd   :  { %p4192_p7 = pnand %p4191_p6, %p4185_p3 }
   0xf   :  { %4195 = shalt.err (!%p4192_p7)
}
  0x10   :  { %s4223_s7 = smov 256   ;;  %s4224_s8 = smov 16  }
  0x11   :  { %26 = dma.hbm_to_vmem [thread:$0]  %s4420_s1, 28672, %s21_s22, [#allocation3], %s4223_s7, %s4223_s7, %s4224_s8  }
  0x12   :  { %s4225_s11 = smov [#allocation4]   ;;  %s4196_s15 = scalar_lea.hbm %s4421_s2, 16384 }
  0x13   :  { %s32_s12 = sshll.u32 %s4225_s11, 4  ;;  %p4197_p8 = scmp.ne.s32.totalorder %s4421_s2, %s4196_s15  ;;  %s33_s12 = int_to_ptr.vmem [resolvable:$true] %s32_s12 }
  0x14   :  { %p4200_p9 = scmp.lt.u32.totalorder %s4196_s15, %s4421_s2 }
  0x16   :  { %p4202_p10 = pnand %p4200_p9, %p4197_p8 }
  0x18   :  { %4205 = shalt.err (!%p4202_p10)
}
  0x19   :  { %s4206_s20 = scalar_lea.vmem %s33_s12, 16384  ;;  %p4211_p12 = scmp.lt.s32.totalorder %s33_s12, %s33_s12 }
  0x1a   :  { %p4207_p11 = scmp.ne.s32.totalorder %s33_s12, %s4206_s20  ;;  %p4212_p13 = scmp.lt.s32.totalorder %s4206_s20, %s4206_s20 }
  0x1c   :  { %p4213_p0 = por %p4212_p13, %p4211_p12 }
  0x1e   :  { %p4214_p1 = pnand %p4213_p0, %p4207_p11 }
  0x20   :  { %4217 = shalt.err (!%p4214_p1)
}
  0x21   :  { %38 = dma.hbm_to_vmem [thread:$0]  %s4421_s2, 16384, %s33_s12, [#allocation5], %s4223_s7, %s4223_s7, %s4224_s8  }
  0x22   :  { %4218 = dma.done.wait [#allocation3], 28672  }
  0x23   :  { %4219 = vsyncadd [#allocation3], 4294938624 }
  0x24   :  { %4220 = dma.done.wait [#allocation5], 16384  }
  0x25   :  { %4221 = vsyncadd [#allocation5], 4294950912  ;;  %v3604_v0 = vld [vmem:[#allocation2 + $0x4] ss:$16 sps:$4 sm:$0xff]   ;;  %v3606_v1 = vld [vmem:[#allocation2 + $0xc] ss:$16 sps:$4 sm:$0xff]  }
  0x26   :  { %1440 = vmatprep.subr.bf16.mxu0 %v3604_v0  ;;  %v3608_v2 = vld [vmem:[#allocation2] ss:$16 sps:$4 sm:$0xff]   ;;  %v3609_v3 = vld [vmem:[#allocation2 + $0x8] ss:$16 sps:$4 sm:$0xff]   ;;  %1612 = vmatprep.subr.bf16.mxu1 %v3606_v1  ;;  %v3610_v4 = vld [vmem:[#allocation2 + $0x24] ss:$16 sps:$4 sm:$0xff]  }
  0x27   :  { %1441 = vmatpush1.bf16.msra.mxu0 %v3608_v2  ;;  %1613 = vmatpush1.bf16.msra.mxu1 %v3609_v3  ;;  %v3612_v5 = vld [vmem:[#allocation2 + $0x2c] ss:$16 sps:$4 sm:$0xff]   ;;  %v3614_v6 = vld [vmem:[#allocation2 + $0x20] ss:$16 sps:$4 sm:$0xff]   ;;  %v3615_v7 = vld [vmem:[#allocation2 + $0x28] ss:$16 sps:$4 sm:$0xff]  }
  0x28   :  { %1442 = vmatprep.subr.bf16.mxu0 %v3610_v4  ;;  %1614 = vmatprep.subr.bf16.mxu1 %v3612_v5  ;;  %v3616_v8 = vld [vmem:[#allocation2 + $0x44] ss:$16 sps:$4 sm:$0xff]   ;;  %v3618_v9 = vld [vmem:[#allocation2 + $0x4c] ss:$16 sps:$4 sm:$0xff]   ;;  %v3620_v10 = vld [vmem:[#allocation2 + $0x40] ss:$16 sps:$4 sm:$0xff]  }
  0x29   :  { %v3621_v11 = vld [vmem:[#allocation2 + $0x48] ss:$16 sps:$4 sm:$0xff]   ;;  %v3622_v12 = vld [vmem:[#allocation2 + $0x64] ss:$16 sps:$4 sm:$0xff]   ;;  %v3624_v13 = vld [vmem:[#allocation2 + $0x6c] ss:$16 sps:$4 sm:$0xff]  }
  0x2a   :  { %v3626_v14 = vld [vmem:[#allocation2 + $0x60] ss:$16 sps:$4 sm:$0xff]   ;;  %v3627_v15 = vld [vmem:[#allocation2 + $0x68] ss:$16 sps:$4 sm:$0xff]   ;;  %v3628_v16 = vld [vmem:[#allocation2 + $0x84] ss:$16 sps:$4 sm:$0xff]  }
  0x2b   :  { %1443 = vmatpush1.bf16.msra.mxu0 %v3614_v6  ;;  %1615 = vmatpush1.bf16.msra.mxu1 %v3615_v7  ;;  %v3630_v17 = vld [vmem:[#allocation2 + $0x8c] ss:$16 sps:$4 sm:$0xff]   ;;  %v3632_v18 = vld [vmem:[#allocation2 + $0x80] ss:$16 sps:$4 sm:$0xff]   ;;  %v3633_v19 = vld [vmem:[#allocation2 + $0x88] ss:$16 sps:$4 sm:$0xff]  }
  0x2c   :  { %1444 = vmatprep.subr.bf16.mxu0 %v3616_v8  ;;  %1616 = vmatprep.subr.bf16.mxu1 %v3618_v9  ;;  %v3634_v20 = vld [vmem:[#allocation2 + $0xa4] ss:$16 sps:$4 sm:$0xff]   ;;  %v3636_v21 = vld [vmem:[#allocation2 + $0xac] ss:$16 sps:$4 sm:$0xff]   ;;  %v3638_v22 = vld [vmem:[#allocation2 + $0xa0] ss:$16 sps:$4 sm:$0xff]  }
  0x2d   :  { %v3639_v23 = vld [vmem:[#allocation2 + $0xa8] ss:$16 sps:$4 sm:$0xff]   ;;  %v3640_v24 = vld [vmem:[#allocation2 + $0xc4] ss:$16 sps:$4 sm:$0xff]   ;;  %v3642_v25 = vld [vmem:[#allocation2 + $0xcc] ss:$16 sps:$4 sm:$0xff]  }
  0x2e   :  { %v3644_v26 = vld [vmem:[#allocation2 + $0xc0] ss:$16 sps:$4 sm:$0xff]   ;;  %v3645_v27 = vld [vmem:[#allocation2 + $0xc8] ss:$16 sps:$4 sm:$0xff]   ;;  %v3646_v28 = vld [vmem:[#allocation2 + $0xe4] ss:$16 sps:$4 sm:$0xff]  }
  0x2f   :  { %1445 = vmatpush1.bf16.msra.mxu0 %v3620_v10  ;;  %1617 = vmatpush1.bf16.msra.mxu1 %v3621_v11  ;;  %v3648_v29 = vld [vmem:[#allocation2 + $0xec] ss:$16 sps:$4 sm:$0xff]   ;;  %v3650_v30 = vld [vmem:[#allocation2 + $0xe0] ss:$16 sps:$4 sm:$0xff]   ;;  %v3651_v31 = vld [vmem:[#allocation2 + $0xe8] ss:$16 sps:$4 sm:$0xff]  }
  0x30   :  { %1446 = vmatprep.subr.bf16.mxu0 %v3622_v12  ;;  %1618 = vmatprep.subr.bf16.mxu1 %v3624_v13  ;;  %v3652_v32 = vld [vmem:[#allocation2 + $0x104] ss:$16 sps:$4 sm:$0xff]   ;;  %v3654_v33 = vld [vmem:[#allocation2 + $0x10c] ss:$16 sps:$4 sm:$0xff]   ;;  %v3656_v34 = vld [vmem:[#allocation2 + $0x100] ss:$16 sps:$4 sm:$0xff]  }
  0x31   :  { %v3657_v35 = vld [vmem:[#allocation2 + $0x108] ss:$16 sps:$4 sm:$0xff]   ;;  %v3658_v36 = vld [vmem:[#allocation2 + $0x124] ss:$16 sps:$4 sm:$0xff]   ;;  %v3660_v37 = vld [vmem:[#allocation2 + $0x12c] ss:$16 sps:$4 sm:$0xff]  }
  0x32   :  { %v3662_v38 = vld [vmem:[#allocation2 + $0x120] ss:$16 sps:$4 sm:$0xff]   ;;  %v3663_v39 = vld [vmem:[#allocation2 + $0x128] ss:$16 sps:$4 sm:$0xff]   ;;  %v3664_v40 = vld [vmem:[#allocation2 + $0x144] ss:$16 sps:$4 sm:$0xff]  }
  0x33   :  { %1447 = vmatpush1.bf16.msra.mxu0 %v3626_v14  ;;  %1619 = vmatpush1.bf16.msra.mxu1 %v3627_v15  ;;  %v3666_v41 = vld [vmem:[#allocation2 + $0x14c] ss:$16 sps:$4 sm:$0xff]   ;;  %v3668_v42 = vld [vmem:[#allocation2 + $0x140] ss:$16 sps:$4 sm:$0xff]   ;;  %v3669_v43 = vld [vmem:[#allocation2 + $0x148] ss:$16 sps:$4 sm:$0xff]  }
  0x34   :  { %1448 = vmatprep.subr.bf16.mxu0 %v3628_v16  ;;  %1620 = vmatprep.subr.bf16.mxu1 %v3630_v17  ;;  %v3670_v44 = vld [vmem:[#allocation2 + $0x164] ss:$16 sps:$4 sm:$0xff]   ;;  %v3672_v45 = vld [vmem:[#allocation2 + $0x16c] ss:$16 sps:$4 sm:$0xff]   ;;  %v3674_v46 = vld [vmem:[#allocation2 + $0x160] ss:$16 sps:$4 sm:$0xff]  }
  0x35   :  { %v3675_v47 = vld [vmem:[#allocation2 + $0x168] ss:$16 sps:$4 sm:$0xff]   ;;  %v3702_v48 = vld [vmem:[%s4419_s0 + $0x4] ss:$28 sps:$4 sm:$0xff]   ;;  %v3678_v50 = vld [vmem:[#allocation2 + $0x18c] ss:$16 sps:$4 sm:$0xff]  }
  0x36   :  { %v3676_v49 = vld [vmem:[#allocation2 + $0x184] ss:$16 sps:$4 sm:$0xff]   ;;  %1472 = vmatprep.mubr.bf16.mxu0 %v3702_v48  ;;  %1644 = vmatprep.mubr.bf16.mxu1 %v3702_v48  ;;  %v3680_v51 = vld [vmem:[#allocation2 + $0x180] ss:$16 sps:$4 sm:$0xff]   ;;  %v3681_v52 = vld [vmem:[#allocation2 + $0x188] ss:$16 sps:$4 sm:$0xff]  }
  0x37   :  { %1449 = vmatpush1.bf16.msra.mxu0 %v3632_v18  ;;  %1621 = vmatpush1.bf16.msra.mxu1 %v3633_v19  ;;  %v3682_v53 = vld [vmem:[#allocation2 + $0x1a4] ss:$16 sps:$4 sm:$0xff]   ;;  %v3684_v54 = vld [vmem:[#allocation2 + $0x1ac] ss:$16 sps:$4 sm:$0xff]   ;;  %v3686_v55 = vld [vmem:[#allocation2 + $0x1a0] ss:$16 sps:$4 sm:$0xff]  }
  0x38   :  { %1450 = vmatprep.subr.bf16.mxu0 %v3634_v20  ;;  %1622 = vmatprep.subr.bf16.mxu1 %v3636_v21  ;;  %v3687_v56 = vld [vmem:[#allocation2 + $0x1a8] ss:$16 sps:$4 sm:$0xff]   ;;  %v3688_v57 = vld [vmem:[#allocation2 + $0x1c4] ss:$16 sps:$4 sm:$0xff]   ;;  %v3690_v58 = vld [vmem:[#allocation2 + $0x1cc] ss:$16 sps:$4 sm:$0xff]  }
  0x39   :  { %v3692_v59 = vld [vmem:[#allocation2 + $0x1c0] ss:$16 sps:$4 sm:$0xff]   ;;  %v3693_v60 = vld [vmem:[#allocation2 + $0x1c8] ss:$16 sps:$4 sm:$0xff]   ;;  %v3694_v61 = vld [vmem:[#allocation2 + $0x1e4] ss:$16 sps:$4 sm:$0xff]  }
  0x3a   :  { %v3696_v62 = vld [vmem:[#allocation2 + $0x1ec] ss:$16 sps:$4 sm:$0xff]   ;;  %v3698_v63 = vld [vmem:[#allocation2 + $0x1e0] ss:$16 sps:$4 sm:$0xff]   ;;  %v3699_v0 = vld [vmem:[#allocation2 + $0x1e8] ss:$16 sps:$4 sm:$0xff]  }
  0x3b   :  { %1451 = vmatpush1.bf16.msra.mxu0 %v3638_v22  ;;  %1623 = vmatpush1.bf16.msra.mxu1 %v3639_v23  ;;  %v3705_v1 = vld [vmem:[#allocation2 + $0x204] ss:$16 sps:$4 sm:$0xff]   ;;  %v3708_v2 = vld [vmem:[#allocation2 + $0x20c] ss:$16 sps:$4 sm:$0xff]   ;;  %v3703_v4 = vld [vmem:[#allocation2 + $0x200] ss:$16 sps:$4 sm:$0xff]  }
  0x3c   :  { %1452 = vmatprep.subr.bf16.mxu0 %v3640_v24  ;;  %1624 = vmatprep.subr.bf16.mxu1 %v3642_v25  ;;  %v3700_v3 = vld [vmem:[%s4419_s0] ss:$28 sps:$4 sm:$0xff]   ;;  %v3706_v5 = vld [vmem:[#allocation2 + $0x208] ss:$16 sps:$4 sm:$0xff]   ;;  %v3711_v6 = vld [vmem:[#allocation2 + $0x224] ss:$16 sps:$4 sm:$0xff]  }
  0x3d   :  { %v3714_v7 = vld [vmem:[#allocation2 + $0x22c] ss:$16 sps:$4 sm:$0xff]   ;;  %v3709_v8 = vld [vmem:[#allocation2 + $0x220] ss:$16 sps:$4 sm:$0xff]   ;;  %v3712_v9 = vld [vmem:[#allocation2 + $0x228] ss:$16 sps:$4 sm:$0xff]  }
  0x3e   :  { %v3717_v10 = vld [vmem:[#allocation2 + $0x244] ss:$16 sps:$4 sm:$0xff]   ;;  %v3720_v11 = vld [vmem:[#allocation2 + $0x24c] ss:$16 sps:$4 sm:$0xff]   ;;  %v3715_v12 = vld [vmem:[#allocation2 + $0x240] ss:$16 sps:$4 sm:$0xff]  }
  0x3f   :  { %1453 = vmatpush1.bf16.msra.mxu0 %v3644_v26  ;;  %1625 = vmatpush1.bf16.msra.mxu1 %v3645_v27  ;;  %v3718_v13 = vld [vmem:[#allocation2 + $0x248] ss:$16 sps:$4 sm:$0xff]   ;;  %v3723_v14 = vld [vmem:[#allocation2 + $0x264] ss:$16 sps:$4 sm:$0xff]   ;;  %v3726_v15 = vld [vmem:[#allocation2 + $0x26c] ss:$16 sps:$4 sm:$0xff]  }
  0x40   :  { %1454 = vmatprep.subr.bf16.mxu0 %v3646_v28  ;;  %1626 = vmatprep.subr.bf16.mxu1 %v3648_v29  ;;  %v3721_v16 = vld [vmem:[#allocation2 + $0x260] ss:$16 sps:$4 sm:$0xff]   ;;  %v3724_v17 = vld [vmem:[#allocation2 + $0x268] ss:$16 sps:$4 sm:$0xff]   ;;  %v3729_v18 = vld [vmem:[#allocation2 + $0x284] ss:$16 sps:$4 sm:$0xff]  }
  0x41   :  { %v3732_v19 = vld [vmem:[#allocation2 + $0x28c] ss:$16 sps:$4 sm:$0xff]   ;;  %v3727_v20 = vld [vmem:[#allocation2 + $0x280] ss:$16 sps:$4 sm:$0xff]   ;;  %v3730_v21 = vld [vmem:[#allocation2 + $0x288] ss:$16 sps:$4 sm:$0xff]  }
  0x42   :  { %v3735_v22 = vld [vmem:[#allocation2 + $0x2a4] ss:$16 sps:$4 sm:$0xff]   ;;  %v3738_v23 = vld [vmem:[#allocation2 + $0x2ac] ss:$16 sps:$4 sm:$0xff]   ;;  %v3733_v24 = vld [vmem:[#allocation2 + $0x2a0] ss:$16 sps:$4 sm:$0xff]  }
  0x43   :  { %1455 = vmatpush1.bf16.msra.mxu0 %v3650_v30  ;;  %1627 = vmatpush1.bf16.msra.mxu1 %v3651_v31  ;;  %v3736_v25 = vld [vmem:[#allocation2 + $0x2a8] ss:$16 sps:$4 sm:$0xff]   ;;  %v3741_v26 = vld [vmem:[#allocation2 + $0x2c4] ss:$16 sps:$4 sm:$0xff]   ;;  %v3744_v27 = vld [vmem:[#allocation2 + $0x2cc] ss:$16 sps:$4 sm:$0xff]  }
  0x44   :  { %1456 = vmatprep.subr.bf16.mxu0 %v3652_v32  ;;  %1628 = vmatprep.subr.bf16.mxu1 %v3654_v33  ;;  %v3739_v28 = vld [vmem:[#allocation2 + $0x2c0] ss:$16 sps:$4 sm:$0xff]   ;;  %v3742_v29 = vld [vmem:[#allocation2 + $0x2c8] ss:$16 sps:$4 sm:$0xff]   ;;  %v3747_v31 = vld [vmem:[#allocation2 + $0x2e4] ss:$16 sps:$4 sm:$0xff]  }
  0x45   :  { %v3801_v30 = vld [vmem:[%s4419_s0 + $0xc] ss:$28 sps:$4 sm:$0xff]   ;;  %v3745_v33 = vld [vmem:[#allocation2 + $0x2e0] ss:$16 sps:$4 sm:$0xff]  }
  0x46   :  { %v3750_v32 = vld [vmem:[#allocation2 + $0x2ec] ss:$16 sps:$4 sm:$0xff]  }
  0x47   :  { %1457 = vmatpush1.bf16.msra.mxu0 %v3656_v34  ;;  %1629 = vmatpush1.bf16.msra.mxu1 %v3657_v35  ;;  %v3748_v34 = vld [vmem:[#allocation2 + $0x2e8] ss:$16 sps:$4 sm:$0xff]   ;;  %v3753_v35 = vld [vmem:[#allocation2 + $0x304] ss:$16 sps:$4 sm:$0xff]   ;;  %v3774_v48 = vld [vmem:[#allocation2 + $0x36c] ss:$16 sps:$4 sm:$0xff]  }
  0x48   :  { %1458 = vmatprep.subr.bf16.mxu0 %v3658_v36  ;;  %1630 = vmatprep.subr.bf16.mxu1 %v3660_v37  ;;  %v3756_v36 = vld [vmem:[#allocation2 + $0x30c] ss:$16 sps:$4 sm:$0xff]   ;;  %v3751_v37 = vld [vmem:[#allocation2 + $0x300] ss:$16 sps:$4 sm:$0xff]  }
  0x4b   :  { %1459 = vmatpush1.bf16.msra.mxu0 %v3662_v38  ;;  %1631 = vmatpush1.bf16.msra.mxu1 %v3663_v39  ;;  %v3754_v38 = vld [vmem:[#allocation2 + $0x308] ss:$16 sps:$4 sm:$0xff]   ;;  %v3759_v39 = vld [vmem:[#allocation2 + $0x324] ss:$16 sps:$4 sm:$0xff]  }
  0x4c   :  { %1460 = vmatprep.subr.bf16.mxu0 %v3664_v40  ;;  %1632 = vmatprep.subr.bf16.mxu1 %v3666_v41  ;;  %v3762_v40 = vld [vmem:[#allocation2 + $0x32c] ss:$16 sps:$4 sm:$0xff]   ;;  %v3757_v41 = vld [vmem:[#allocation2 + $0x320] ss:$16 sps:$4 sm:$0xff]  }
  0x4f   :  { %1461 = vmatpush1.bf16.msra.mxu0 %v3668_v42  ;;  %1633 = vmatpush1.bf16.msra.mxu1 %v3669_v43  ;;  %v3760_v42 = vld [vmem:[#allocation2 + $0x328] ss:$16 sps:$4 sm:$0xff]   ;;  %v3765_v43 = vld [vmem:[#allocation2 + $0x344] ss:$16 sps:$4 sm:$0xff]  }
  0x50   :  { %1462 = vmatprep.subr.bf16.mxu0 %v3670_v44  ;;  %1634 = vmatprep.subr.bf16.mxu1 %v3672_v45  ;;  %v3768_v44 = vld [vmem:[#allocation2 + $0x34c] ss:$16 sps:$4 sm:$0xff]   ;;  %v3763_v45 = vld [vmem:[#allocation2 + $0x340] ss:$16 sps:$4 sm:$0xff]  }
  0x53   :  { %1463 = vmatpush1.bf16.msra.mxu0 %v3674_v46  ;;  %1635 = vmatpush1.bf16.msra.mxu1 %v3675_v47  ;;  %v3766_v46 = vld [vmem:[#allocation2 + $0x348] ss:$16 sps:$4 sm:$0xff]   ;;  %v3771_v47 = vld [vmem:[#allocation2 + $0x364] ss:$16 sps:$4 sm:$0xff]  }
  0x54   :  { %1464 = vmatprep.subr.bf16.mxu0 %v3676_v49  ;;  %1636 = vmatprep.subr.bf16.mxu1 %v3678_v50  ;;  %v3769_v49 = vld [vmem:[#allocation2 + $0x360] ss:$16 sps:$4 sm:$0xff]   ;;  %v3772_v50 = vld [vmem:[#allocation2 + $0x368] ss:$16 sps:$4 sm:$0xff]  }
  0x57   :  { %1465 = vmatpush1.bf16.msra.mxu0 %v3680_v51  ;;  %1637 = vmatpush1.bf16.msra.mxu1 %v3681_v52  ;;  %v3777_v51 = vld [vmem:[#allocation2 + $0x384] ss:$16 sps:$4 sm:$0xff]   ;;  %v3780_v52 = vld [vmem:[#allocation2 + $0x38c] ss:$16 sps:$4 sm:$0xff]  }
  0x58   :  { %1466 = vmatprep.subr.bf16.mxu0 %v3682_v53  ;;  %1638 = vmatprep.subr.bf16.mxu1 %v3684_v54  ;;  %v3775_v53 = vld [vmem:[#allocation2 + $0x380] ss:$16 sps:$4 sm:$0xff]   ;;  %v3778_v54 = vld [vmem:[#allocation2 + $0x388] ss:$16 sps:$4 sm:$0xff]  }
  0x5b   :  { %1467 = vmatpush1.bf16.msra.mxu0 %v3686_v55  ;;  %1639 = vmatpush1.bf16.msra.mxu1 %v3687_v56  ;;  %v3783_v55 = vld [vmem:[#allocation2 + $0x3a4] ss:$16 sps:$4 sm:$0xff]   ;;  %v3786_v56 = vld [vmem:[#allocation2 + $0x3ac] ss:$16 sps:$4 sm:$0xff]  }
  0x5c   :  { %1468 = vmatprep.subr.bf16.mxu0 %v3688_v57  ;;  %1640 = vmatprep.subr.bf16.mxu1 %v3690_v58  ;;  %v3781_v57 = vld [vmem:[#allocation2 + $0x3a0] ss:$16 sps:$4 sm:$0xff]   ;;  %v3784_v58 = vld [vmem:[#allocation2 + $0x3a8] ss:$16 sps:$4 sm:$0xff]  }
  0x5f   :  { %1469 = vmatpush1.bf16.msra.mxu0 %v3692_v59  ;;  %1641 = vmatpush1.bf16.msra.mxu1 %v3693_v60  ;;  %v3789_v59 = vld [vmem:[#allocation2 + $0x3c4] ss:$16 sps:$4 sm:$0xff]   ;;  %v3792_v60 = vld [vmem:[#allocation2 + $0x3cc] ss:$16 sps:$4 sm:$0xff]  }
  0x60   :  { %1470 = vmatprep.subr.bf16.mxu0 %v3694_v61  ;;  %1642 = vmatprep.subr.bf16.mxu1 %v3696_v62  ;;  %v3787_v61 = vld [vmem:[#allocation2 + $0x3c0] ss:$16 sps:$4 sm:$0xff]   ;;  %v3790_v62 = vld [vmem:[#allocation2 + $0x3c8] ss:$16 sps:$4 sm:$0xff]  }
  0x63   :  { %1471 = vmatpush1.bf16.msra.mxu0 %v3698_v63  ;;  %1643 = vmatpush1.bf16.msra.mxu1 %v3699_v0  ;;  %v3795_v63 = vld [vmem:[#allocation2 + $0x3e4] ss:$16 sps:$4 sm:$0xff]   ;;  %v3798_v0 = vld [vmem:[#allocation2 + $0x3ec] ss:$16 sps:$4 sm:$0xff]  }
  0x64   :  { %1483 = vmatprep.subr.bf16.mxu0 %v3705_v1  ;;  %1655 = vmatprep.subr.bf16.mxu1 %v3708_v2  ;;  %v3793_v1 = vld [vmem:[#allocation2 + $0x3e0] ss:$16 sps:$4 sm:$0xff]   ;;  %v3796_v2 = vld [vmem:[#allocation2 + $0x3e8] ss:$16 sps:$4 sm:$0xff]  }
  0x66   :  { %1473 = vmatmul.mubr.bf16.vlgmr.msra.gmra.mrb[0].mxu0 %v3700_v3  ;;  %1645 = vmatmul.mubr.bf16.vlgmr.msra.gmra.mrb[0].mxu1 %v3700_v3  ;;  %v3804_v3 = vld [vmem:[#allocation2 + $0x404] ss:$16 sps:$4 sm:$0xff]  }
  0x67   :  { %1484 = vmatpush1.bf16.msra.mxu0 %v3703_v4  ;;  %1656 = vmatpush1.bf16.msra.mxu1 %v3706_v5  ;;  %v3807_v4 = vld [vmem:[#allocation2 + $0x40c] ss:$16 sps:$4 sm:$0xff]   ;;  %v3799_v5 = vld [vmem:[%s4419_s0 + $0x8] ss:$28 sps:$4 sm:$0xff]  }
  0x68   :  { %1485 = vmatprep.subr.bf16.mxu0 %v3711_v6  ;;  %1657 = vmatprep.subr.bf16.mxu1 %v3714_v7  ;;  %v3802_v6 = vld [vmem:[#allocation2 + $0x400] ss:$16 sps:$4 sm:$0xff]   ;;  %v3805_v7 = vld [vmem:[#allocation2 + $0x408] ss:$16 sps:$4 sm:$0xff]  }
  0x69   :  { %1515 = vmatprep.mubr.bf16.mxu0 %v3801_v30  ;;  %1687 = vmatprep.mubr.bf16.mxu1 %v3801_v30  ;;  %v3843_v30 = vld [vmem:[#allocation2 + $0x4cc] ss:$16 sps:$4 sm:$0xff]  }
  0x6b   :  { %1486 = vmatpush1.bf16.msra.mxu0 %v3709_v8  ;;  %1658 = vmatpush1.bf16.msra.mxu1 %v3712_v9  ;;  %v3810_v8 = vld [vmem:[#allocation2 + $0x424] ss:$16 sps:$4 sm:$0xff]   ;;  %v3813_v9 = vld [vmem:[#allocation2 + $0x42c] ss:$16 sps:$4 sm:$0xff]  }
  0x6c   :  { %1487 = vmatprep.subr.bf16.mxu0 %v3717_v10  ;;  %1659 = vmatprep.subr.bf16.mxu1 %v3720_v11  ;;  %v3808_v10 = vld [vmem:[#allocation2 + $0x420] ss:$16 sps:$4 sm:$0xff]   ;;  %v3811_v11 = vld [vmem:[#allocation2 + $0x428] ss:$16 sps:$4 sm:$0xff]  }
  0x6f   :  { %1488 = vmatpush1.bf16.msra.mxu0 %v3715_v12  ;;  %1660 = vmatpush1.bf16.msra.mxu1 %v3718_v13  ;;  %v3900_v12 = vld [vmem:[%s4419_s0 + $0x14] ss:$28 sps:$4 sm:$0xff]  }
  0x70   :  { %1489 = vmatprep.subr.bf16.mxu0 %v3723_v14  ;;  %1661 = vmatprep.subr.bf16.mxu1 %v3726_v15  ;;  %v3816_v13 = vld [vmem:[#allocation2 + $0x444] ss:$16 sps:$4 sm:$0xff]   ;;  %v3819_v14 = vld [vmem:[#allocation2 + $0x44c] ss:$16 sps:$4 sm:$0xff]   ;;  %v3814_v15 = vld [vmem:[#allocation2 + $0x440] ss:$16 sps:$4 sm:$0xff]  }
  0x73   :  { %1490 = vmatpush1.bf16.msra.mxu0 %v3721_v16  ;;  %1662 = vmatpush1.bf16.msra.mxu1 %v3724_v17  ;;  %v3817_v16 = vld [vmem:[#allocation2 + $0x448] ss:$16 sps:$4 sm:$0xff]   ;;  %v3822_v17 = vld [vmem:[#allocation2 + $0x464] ss:$16 sps:$4 sm:$0xff]  }
  0x74   :  { %1491 = vmatprep.subr.bf16.mxu0 %v3729_v18  ;;  %1663 = vmatprep.subr.bf16.mxu1 %v3732_v19  ;;  %v3825_v18 = vld [vmem:[#allocation2 + $0x46c] ss:$16 sps:$4 sm:$0xff]   ;;  %v3820_v19 = vld [vmem:[#allocation2 + $0x460] ss:$16 sps:$4 sm:$0xff]  }
  0x77   :  { %1492 = vmatpush1.bf16.msra.mxu0 %v3727_v20  ;;  %1664 = vmatpush1.bf16.msra.mxu1 %v3730_v21  ;;  %v3823_v20 = vld [vmem:[#allocation2 + $0x468] ss:$16 sps:$4 sm:$0xff]   ;;  %v3828_v21 = vld [vmem:[#allocation2 + $0x484] ss:$16 sps:$4 sm:$0xff]  }
  0x78   :  { %1493 = vmatprep.subr.bf16.mxu0 %v3735_v22  ;;  %1665 = vmatprep.subr.bf16.mxu1 %v3738_v23  ;;  %v3831_v22 = vld [vmem:[#allocation2 + $0x48c] ss:$16 sps:$4 sm:$0xff]   ;;  %v3826_v23 = vld [vmem:[#allocation2 + $0x480] ss:$16 sps:$4 sm:$0xff]  }
  0x7b   :  { %1494 = vmatpush1.bf16.msra.mxu0 %v3733_v24  ;;  %1666 = vmatpush1.bf16.msra.mxu1 %v3736_v25  ;;  %v3829_v24 = vld [vmem:[#allocation2 + $0x488] ss:$16 sps:$4 sm:$0xff]   ;;  %v3834_v25 = vld [vmem:[#allocation2 + $0x4a4] ss:$16 sps:$4 sm:$0xff]  }
  0x7c   :  { %1495 = vmatprep.subr.bf16.mxu0 %v3741_v26  ;;  %1667 = vmatprep.subr.bf16.mxu1 %v3744_v27  ;;  %v3837_v26 = vld [vmem:[#allocation2 + $0x4ac] ss:$16 sps:$4 sm:$0xff]   ;;  %v3832_v27 = vld [vmem:[#allocation2 + $0x4a0] ss:$16 sps:$4 sm:$0xff]  }
  0x7f   :  { %1496 = vmatpush1.bf16.msra.mxu0 %v3739_v28  ;;  %1668 = vmatpush1.bf16.msra.mxu1 %v3742_v29  ;;  %v3835_v28 = vld [vmem:[#allocation2 + $0x4a8] ss:$16 sps:$4 sm:$0xff]   ;;  %v3840_v29 = vld [vmem:[#allocation2 + $0x4c4] ss:$16 sps:$4 sm:$0xff]  }
  0x80   :  { %1497 = vmatprep.subr.bf16.mxu0 %v3747_v31  ;;  %1669 = vmatprep.subr.bf16.mxu1 %v3750_v32  ;;  %v3838_v31 = vld [vmem:[#allocation2 + $0x4c0] ss:$16 sps:$4 sm:$0xff]   ;;  %v3841_v32 = vld [vmem:[#allocation2 + $0x4c8] ss:$16 sps:$4 sm:$0xff]  }
  0x83   :  { %1498 = vmatpush1.bf16.msra.mxu0 %v3745_v33  ;;  %1670 = vmatpush1.bf16.msra.mxu1 %v3748_v34  ;;  %v3846_v33 = vld [vmem:[#allocation2 + $0x4e4] ss:$16 sps:$4 sm:$0xff]   ;;  %v3849_v34 = vld [vmem:[#allocation2 + $0x4ec] ss:$16 sps:$4 sm:$0xff]  }
  0x84   :  { %1499 = vmatprep.subr.bf16.mxu0 %v3753_v35  ;;  %1671 = vmatprep.subr.bf16.mxu1 %v3756_v36  ;;  %v3844_v35 = vld [vmem:[#allocation2 + $0x4e0] ss:$16 sps:$4 sm:$0xff]   ;;  %v3847_v36 = vld [vmem:[#allocation2 + $0x4e8] ss:$16 sps:$4 sm:$0xff]  }
  0x87   :  { %1500 = vmatpush1.bf16.msra.mxu0 %v3751_v37  ;;  %1672 = vmatpush1.bf16.msra.mxu1 %v3754_v38  ;;  %v3852_v37 = vld [vmem:[#allocation2 + $0x504] ss:$16 sps:$4 sm:$0xff]   ;;  %v3855_v38 = vld [vmem:[#allocation2 + $0x50c] ss:$16 sps:$4 sm:$0xff]  }
  0x88   :  { %1501 = vmatprep.subr.bf16.mxu0 %v3759_v39  ;;  %1673 = vmatprep.subr.bf16.mxu1 %v3762_v40  ;;  %v3850_v39 = vld [vmem:[#allocation2 + $0x500] ss:$16 sps:$4 sm:$0xff]   ;;  %v3853_v40 = vld [vmem:[#allocation2 + $0x508] ss:$16 sps:$4 sm:$0xff]  }
  0x8b   :  { %1502 = vmatpush1.bf16.msra.mxu0 %v3757_v41  ;;  %1674 = vmatpush1.bf16.msra.mxu1 %v3760_v42  ;;  %v3858_v41 = vld [vmem:[#allocation2 + $0x524] ss:$16 sps:$4 sm:$0xff]   ;;  %v3861_v42 = vld [vmem:[#allocation2 + $0x52c] ss:$16 sps:$4 sm:$0xff]  }
  0x8c   :  { %1503 = vmatprep.subr.bf16.mxu0 %v3765_v43  ;;  %1675 = vmatprep.subr.bf16.mxu1 %v3768_v44  ;;  %v3856_v43 = vld [vmem:[#allocation2 + $0x520] ss:$16 sps:$4 sm:$0xff]   ;;  %v3859_v44 = vld [vmem:[#allocation2 + $0x528] ss:$16 sps:$4 sm:$0xff]  }
  0x8f   :  { %1504 = vmatpush1.bf16.msra.mxu0 %v3763_v45  ;;  %1676 = vmatpush1.bf16.msra.mxu1 %v3766_v46  ;;  %v3864_v45 = vld [vmem:[#allocation2 + $0x544] ss:$16 sps:$4 sm:$0xff]   ;;  %v3867_v46 = vld [vmem:[#allocation2 + $0x54c] ss:$16 sps:$4 sm:$0xff]  }
  0x90   :  { %1505 = vmatprep.subr.bf16.mxu0 %v3771_v47  ;;  %1677 = vmatprep.subr.bf16.mxu1 %v3774_v48  ;;  %v3862_v47 = vld [vmem:[#allocation2 + $0x540] ss:$16 sps:$4 sm:$0xff]   ;;  %v3865_v48 = vld [vmem:[#allocation2 + $0x548] ss:$16 sps:$4 sm:$0xff]  }
  0x93   :  { %1506 = vmatpush1.bf16.msra.mxu0 %v3769_v49  ;;  %1678 = vmatpush1.bf16.msra.mxu1 %v3772_v50  ;;  %v3870_v49 = vld [vmem:[#allocation2 + $0x564] ss:$16 sps:$4 sm:$0xff]   ;;  %v3873_v50 = vld [vmem:[#allocation2 + $0x56c] ss:$16 sps:$4 sm:$0xff]  }
  0x94   :  { %1507 = vmatprep.subr.bf16.mxu0 %v3777_v51  ;;  %1679 = vmatprep.subr.bf16.mxu1 %v3780_v52  ;;  %v3868_v51 = vld [vmem:[#allocation2 + $0x560] ss:$16 sps:$4 sm:$0xff]   ;;  %v3871_v52 = vld [vmem:[#allocation2 + $0x568] ss:$16 sps:$4 sm:$0xff]  }
  0x97   :  { %1508 = vmatpush1.bf16.msra.mxu0 %v3775_v53  ;;  %1680 = vmatpush1.bf16.msra.mxu1 %v3778_v54  ;;  %v3876_v53 = vld [vmem:[#allocation2 + $0x584] ss:$16 sps:$4 sm:$0xff]   ;;  %v3879_v54 = vld [vmem:[#allocation2 + $0x58c] ss:$16 sps:$4 sm:$0xff]  }
  0x98   :  { %1509 = vmatprep.subr.bf16.mxu0 %v3783_v55  ;;  %1681 = vmatprep.subr.bf16.mxu1 %v3786_v56  ;;  %v3874_v55 = vld [vmem:[#allocation2 + $0x580] ss:$16 sps:$4 sm:$0xff]   ;;  %v3877_v56 = vld [vmem:[#allocation2 + $0x588] ss:$16 sps:$4 sm:$0xff]  }
  0x9b   :  { %1510 = vmatpush1.bf16.msra.mxu0 %v3781_v57  ;;  %1682 = vmatpush1.bf16.msra.mxu1 %v3784_v58  ;;  %v3882_v57 = vld [vmem:[#allocation2 + $0x5a4] ss:$16 sps:$4 sm:$0xff]   ;;  %v3885_v58 = vld [vmem:[#allocation2 + $0x5ac] ss:$16 sps:$4 sm:$0xff]  }
  0x9c   :  { %1511 = vmatprep.subr.bf16.mxu0 %v3789_v59  ;;  %1683 = vmatprep.subr.bf16.mxu1 %v3792_v60  ;;  %v3880_v59 = vld [vmem:[#allocation2 + $0x5a0] ss:$16 sps:$4 sm:$0xff]   ;;  %v3883_v60 = vld [vmem:[#allocation2 + $0x5a8] ss:$16 sps:$4 sm:$0xff]  }
  0x9f   :  { %1512 = vmatpush1.bf16.msra.mxu0 %v3787_v61  ;;  %1684 = vmatpush1.bf16.msra.mxu1 %v3790_v62  ;;  %v3888_v61 = vld [vmem:[#allocation2 + $0x5c4] ss:$16 sps:$4 sm:$0xff]   ;;  %v3891_v62 = vld [vmem:[#allocation2 + $0x5cc] ss:$16 sps:$4 sm:$0xff]  }
  0xa0   :  { %1513 = vmatprep.subr.bf16.mxu0 %v3795_v63  ;;  %1685 = vmatprep.subr.bf16.mxu1 %v3798_v0  ;;  %v3886_v63 = vld [vmem:[#allocation2 + $0x5c0] ss:$16 sps:$4 sm:$0xff]   ;;  %v3889_v0 = vld [vmem:[#allocation2 + $0x5c8] ss:$16 sps:$4 sm:$0xff]  }
  0xa3   :  { %1514 = vmatpush1.bf16.msra.mxu0 %v3793_v1  ;;  %1686 = vmatpush1.bf16.msra.mxu1 %v3796_v2  ;;  %v3894_v1 = vld [vmem:[#allocation2 + $0x5e4] ss:$16 sps:$4 sm:$0xff]   ;;  %v3897_v2 = vld [vmem:[#allocation2 + $0x5ec] ss:$16 sps:$4 sm:$0xff]  }
  0xa4   :  { %1526 = vmatprep.subr.bf16.mxu0 %v3804_v3  ;;  %1698 = vmatprep.subr.bf16.mxu1 %v3807_v4  ;;  %v3892_v3 = vld [vmem:[#allocation2 + $0x5e0] ss:$16 sps:$4 sm:$0xff]   ;;  %v3895_v4 = vld [vmem:[#allocation2 + $0x5e8] ss:$16 sps:$4 sm:$0xff]  }
  0xa6   :  { %1516 = vmatmul.mubr.bf16.vlgmr.msra.gmra.mrb[0].mxu0 %v3799_v5  ;;  %1688 = vmatmul.mubr.bf16.vlgmr.msra.gmra.mrb[0].mxu1 %v3799_v5  ;;  %v3903_v5 = vld [vmem:[#allocation2 + $0x604] ss:$16 sps:$4 sm:$0xff]  }
  0xa7   :  { %1527 = vmatpush1.bf16.msra.mxu0 %v3802_v6  ;;  %1699 = vmatpush1.bf16.msra.mxu1 %v3805_v7  ;;  %v3898_v6 = vld [vmem:[%s4419_s0 + $0x10] ss:$28 sps:$4 sm:$0xff]  }
  0xa8   :  { %1528 = vmatprep.subr.bf16.mxu0 %v3810_v8  ;;  %1700 = vmatprep.subr.bf16.mxu1 %v3813_v9  ;;  %v3906_v7 = vld [vmem:[#allocation2 + $0x60c] ss:$16 sps:$4 sm:$0xff]   ;;  %v3901_v8 = vld [vmem:[#allocation2 + $0x600] ss:$16 sps:$4 sm:$0xff]   ;;  %v3904_v9 = vld [vmem:[#allocation2 + $0x608] ss:$16 sps:$4 sm:$0xff]  }
  0xa9   :  { %1558 = vmatprep.mubr.bf16.mxu0 %v3900_v12  ;;  %1730 = vmatprep.mubr.bf16.mxu1 %v3900_v12  ;;  %v3907_v12 = vld [vmem:[#allocation2 + $0x620] ss:$16 sps:$4 sm:$0xff]  }
  0xab   :  { %1529 = vmatpush1.bf16.msra.mxu0 %v3808_v10  ;;  %1701 = vmatpush1.bf16.msra.mxu1 %v3811_v11  ;;  %v3909_v10 = vld [vmem:[#allocation2 + $0x624] ss:$16 sps:$4 sm:$0xff]   ;;  %v3912_v11 = vld [vmem:[#allocation2 + $0x62c] ss:$16 sps:$4 sm:$0xff]  }
  0xac   :  { %1530 = vmatprep.subr.bf16.mxu0 %v3816_v13  ;;  %1702 = vmatprep.subr.bf16.mxu1 %v3819_v14  ;;  %v3910_v13 = vld [vmem:[#allocation2 + $0x628] ss:$16 sps:$4 sm:$0xff]   ;;  %v3915_v14 = vld [vmem:[#allocation2 + $0x644] ss:$16 sps:$4 sm:$0xff]  }
  0xaf   :  { %1531 = vmatpush1.bf16.msra.mxu0 %v3814_v15  ;;  %1703 = vmatpush1.bf16.msra.mxu1 %v3817_v16  ;;  %v3918_v15 = vld [vmem:[#allocation2 + $0x64c] ss:$16 sps:$4 sm:$0xff]   ;;  %v3913_v16 = vld [vmem:[#allocation2 + $0x640] ss:$16 sps:$4 sm:$0xff]  }
  0xb0   :  { %1532 = vmatprep.subr.bf16.mxu0 %v3822_v17  ;;  %1704 = vmatprep.subr.bf16.mxu1 %v3825_v18  ;;  %v3916_v17 = vld [vmem:[#allocation2 + $0x648] ss:$16 sps:$4 sm:$0xff]   ;;  %v4226_v18 = vmov 0  }
  0xb3   :  { %1533 = vmatpush1.bf16.msra.mxu0 %v3820_v19  ;;  %1705 = vmatpush1.bf16.msra.mxu1 %v3823_v20  ;;  %v3921_v19 = vld [vmem:[#allocation2 + $0x664] ss:$16 sps:$4 sm:$0xff]   ;;  %v3924_v20 = vld [vmem:[#allocation2 + $0x66c] ss:$16 sps:$4 sm:$0xff]  }
  0xb4   :  { %1534 = vmatprep.subr.bf16.mxu0 %v3828_v21  ;;  %1706 = vmatprep.subr.bf16.mxu1 %v3831_v22  ;;  %v3919_v21 = vld [vmem:[#allocation2 + $0x660] ss:$16 sps:$4 sm:$0xff]   ;;  %v3922_v22 = vld [vmem:[#allocation2 + $0x668] ss:$16 sps:$4 sm:$0xff]  }
  0xb7   :  { %1535 = vmatpush1.bf16.msra.mxu0 %v3826_v23  ;;  %1707 = vmatpush1.bf16.msra.mxu1 %v3829_v24  ;;  %v3927_v23 = vld [vmem:[#allocation2 + $0x684] ss:$16 sps:$4 sm:$0xff]   ;;  %v3930_v24 = vld [vmem:[#allocation2 + $0x68c] ss:$16 sps:$4 sm:$0xff]  }
  0xb8   :  { %1536 = vmatprep.subr.bf16.mxu0 %v3834_v25  ;;  %1708 = vmatprep.subr.bf16.mxu1 %v3837_v26  ;;  %v3925_v25 = vld [vmem:[#allocation2 + $0x680] ss:$16 sps:$4 sm:$0xff]   ;;  %v3928_v26 = vld [vmem:[#allocation2 + $0x688] ss:$16 sps:$4 sm:$0xff]  }
  0xbb   :  { %1537 = vmatpush1.bf16.msra.mxu0 %v3832_v27  ;;  %1709 = vmatpush1.bf16.msra.mxu1 %v3835_v28  ;;  %v3933_v27 = vld [vmem:[#allocation2 + $0x6a4] ss:$16 sps:$4 sm:$0xff]   ;;  %v3936_v28 = vld [vmem:[#allocation2 + $0x6ac] ss:$16 sps:$4 sm:$0xff]  }
  0xbc   :  { %1538 = vmatprep.subr.bf16.mxu0 %v3840_v29  ;;  %1710 = vmatprep.subr.bf16.mxu1 %v3843_v30  ;;  %v3931_v29 = vld [vmem:[#allocation2 + $0x6a0] ss:$16 sps:$4 sm:$0xff]   ;;  %v3934_v30 = vld [vmem:[#allocation2 + $0x6a8] ss:$16 sps:$4 sm:$0xff]  }
  0xbf   :  { %1539 = vmatpush1.bf16.msra.mxu0 %v3838_v31  ;;  %1711 = vmatpush1.bf16.msra.mxu1 %v3841_v32  ;;  %v3939_v31 = vld [vmem:[#allocation2 + $0x6c4] ss:$16 sps:$4 sm:$0xff]   ;;  %v3942_v32 = vld [vmem:[#allocation2 + $0x6cc] ss:$16 sps:$4 sm:$0xff]  }
  0xc0   :  { %1540 = vmatprep.subr.bf16.mxu0 %v3846_v33  ;;  %1712 = vmatprep.subr.bf16.mxu1 %v3849_v34  ;;  %v3937_v33 = vld [vmem:[#allocation2 + $0x6c0] ss:$16 sps:$4 sm:$0xff]   ;;  %v3940_v34 = vld [vmem:[#allocation2 + $0x6c8] ss:$16 sps:$4 sm:$0xff]  }
  0xc3   :  { %1541 = vmatpush1.bf16.msra.mxu0 %v3844_v35  ;;  %1713 = vmatpush1.bf16.msra.mxu1 %v3847_v36  ;;  %v3945_v35 = vld [vmem:[#allocation2 + $0x6e4] ss:$16 sps:$4 sm:$0xff]   ;;  %v3948_v36 = vld [vmem:[#allocation2 + $0x6ec] ss:$16 sps:$4 sm:$0xff]  }
  0xc4   :  { %1542 = vmatprep.subr.bf16.mxu0 %v3852_v37  ;;  %1714 = vmatprep.subr.bf16.mxu1 %v3855_v38  ;;  %v3943_v37 = vld [vmem:[#allocation2 + $0x6e0] ss:$16 sps:$4 sm:$0xff]   ;;  %v3946_v38 = vld [vmem:[#allocation2 + $0x6e8] ss:$16 sps:$4 sm:$0xff]  }
  0xc7   :  { %1543 = vmatpush1.bf16.msra.mxu0 %v3850_v39  ;;  %1715 = vmatpush1.bf16.msra.mxu1 %v3853_v40  ;;  %v3952_v39 = vld [vmem:[#allocation4 + $0x4] ss:$16 sps:$4 sm:$0xff]   ;;  %v3955_v40 = vld [vmem:[#allocation4 + $0xc] ss:$16 sps:$4 sm:$0xff]  }
  0xc8   :  { %1544 = vmatprep.subr.bf16.mxu0 %v3858_v41  ;;  %1716 = vmatprep.subr.bf16.mxu1 %v3861_v42  ;;  %v3949_v41 = vld [vmem:[%s4419_s0 + $0x18] ss:$28 sps:$4 sm:$0xff]   ;;  %v3950_v42 = vld [vmem:[#allocation4] ss:$16 sps:$4 sm:$0xff]  }
  0xcb   :  { %1545 = vmatpush1.bf16.msra.mxu0 %v3856_v43  ;;  %1717 = vmatpush1.bf16.msra.mxu1 %v3859_v44  ;;  %v3953_v43 = vld [vmem:[#allocation4 + $0x8] ss:$16 sps:$4 sm:$0xff]   ;;  %v3958_v44 = vld [vmem:[#allocation4 + $0x24] ss:$16 sps:$4 sm:$0xff]  }
  0xcc   :  { %1546 = vmatprep.subr.bf16.mxu0 %v3864_v45  ;;  %1718 = vmatprep.subr.bf16.mxu1 %v3867_v46  ;;  %v3961_v45 = vld [vmem:[#allocation4 + $0x2c] ss:$16 sps:$4 sm:$0xff]   ;;  %v3956_v46 = vld [vmem:[#allocation4 + $0x20] ss:$16 sps:$4 sm:$0xff]  }
  0xcf   :  { %1547 = vmatpush1.bf16.msra.mxu0 %v3862_v47  ;;  %1719 = vmatpush1.bf16.msra.mxu1 %v3865_v48  ;;  %v3959_v47 = vld [vmem:[#allocation4 + $0x28] ss:$16 sps:$4 sm:$0xff]   ;;  %v3964_v48 = vld [vmem:[#allocation4 + $0x44] ss:$16 sps:$4 sm:$0xff]  }
  0xd0   :  { %1548 = vmatprep.subr.bf16.mxu0 %v3870_v49  ;;  %1720 = vmatprep.subr.bf16.mxu1 %v3873_v50  ;;  %v3967_v49 = vld [vmem:[#allocation4 + $0x4c] ss:$16 sps:$4 sm:$0xff]   ;;  %v3962_v50 = vld [vmem:[#allocation4 + $0x40] ss:$16 sps:$4 sm:$0xff]  }
  0xd3   :  { %1549 = vmatpush1.bf16.msra.mxu0 %v3868_v51  ;;  %1721 = vmatpush1.bf16.msra.mxu1 %v3871_v52  ;;  %v3965_v51 = vld [vmem:[#allocation4 + $0x48] ss:$16 sps:$4 sm:$0xff]   ;;  %v3970_v52 = vld [vmem:[#allocation4 + $0x64] ss:$16 sps:$4 sm:$0xff]  }
  0xd4   :  { %1550 = vmatprep.subr.bf16.mxu0 %v3876_v53  ;;  %1722 = vmatprep.subr.bf16.mxu1 %v3879_v54  ;;  %v3973_v53 = vld [vmem:[#allocation4 + $0x6c] ss:$16 sps:$4 sm:$0xff]   ;;  %v3968_v54 = vld [vmem:[#allocation4 + $0x60] ss:$16 sps:$4 sm:$0xff]  }
  0xd7   :  { %1551 = vmatpush1.bf16.msra.mxu0 %v3874_v55  ;;  %1723 = vmatpush1.bf16.msra.mxu1 %v3877_v56  ;;  %v3971_v55 = vld [vmem:[#allocation4 + $0x68] ss:$16 sps:$4 sm:$0xff]   ;;  %v3976_v56 = vld [vmem:[#allocation4 + $0x84] ss:$16 sps:$4 sm:$0xff]  }
  0xd8   :  { %1552 = vmatprep.subr.bf16.mxu0 %v3882_v57  ;;  %1724 = vmatprep.subr.bf16.mxu1 %v3885_v58  ;;  %v3979_v57 = vld [vmem:[#allocation4 + $0x8c] ss:$16 sps:$4 sm:$0xff]   ;;  %v3974_v58 = vld [vmem:[#allocation4 + $0x80] ss:$16 sps:$4 sm:$0xff]  }
  0xdb   :  { %1553 = vmatpush1.bf16.msra.mxu0 %v3880_v59  ;;  %1725 = vmatpush1.bf16.msra.mxu1 %v3883_v60  ;;  %v3977_v59 = vld [vmem:[#allocation4 + $0x88] ss:$16 sps:$4 sm:$0xff]   ;;  %v3982_v60 = vld [vmem:[#allocation4 + $0xa4] ss:$16 sps:$4 sm:$0xff]  }
  0xdc   :  { %1554 = vmatprep.subr.bf16.mxu0 %v3888_v61  ;;  %1726 = vmatprep.subr.bf16.mxu1 %v3891_v62  ;;  %v3985_v61 = vld [vmem:[#allocation4 + $0xac] ss:$16 sps:$4 sm:$0xff]   ;;  %v3980_v62 = vld [vmem:[#allocation4 + $0xa0] ss:$16 sps:$4 sm:$0xff]  }
  0xdf   :  { %1555 = vmatpush1.bf16.msra.mxu0 %v3886_v63  ;;  %1727 = vmatpush1.bf16.msra.mxu1 %v3889_v0  ;;  %v3983_v63 = vld [vmem:[#allocation4 + $0xa8] ss:$16 sps:$4 sm:$0xff]   ;;  %v3988_v0 = vld [vmem:[#allocation4 + $0xc4] ss:$16 sps:$4 sm:$0xff]  }
  0xe0   :  { %1556 = vmatprep.subr.bf16.mxu0 %v3894_v1  ;;  %1728 = vmatprep.subr.bf16.mxu1 %v3897_v2  ;;  %v3991_v1 = vld [vmem:[#allocation4 + $0xcc] ss:$16 sps:$4 sm:$0xff]   ;;  %v3986_v2 = vld [vmem:[#allocation4 + $0xc0] ss:$16 sps:$4 sm:$0xff]  }
  0xe3   :  { %1557 = vmatpush1.bf16.msra.mxu0 %v3892_v3  ;;  %1729 = vmatpush1.bf16.msra.mxu1 %v3895_v4  ;;  %v3989_v3 = vld [vmem:[#allocation4 + $0xc8] ss:$16 sps:$4 sm:$0xff]   ;;  %v3994_v4 = vld [vmem:[#allocation4 + $0xe4] ss:$16 sps:$4 sm:$0xff]  }
  0xe4   :  { %1569 = vmatprep.subr.bf16.mxu0 %v3903_v5  ;;  %1741 = vmatprep.subr.bf16.mxu1 %v3906_v7  ;;  %v3997_v5 = vld [vmem:[#allocation4 + $0xec] ss:$16 sps:$4 sm:$0xff]   ;;  %v3995_v7 = vld [vmem:[#allocation4 + $0xe8] ss:$16 sps:$4 sm:$0xff]  }
  0xe6   :  { %1559 = vmatmul.mubr.bf16.vlgmr.msra.gmra.mrb[0].mxu0 %v3898_v6  ;;  %1731 = vmatmul.mubr.bf16.vlgmr.msra.gmra.mrb[0].mxu1 %v3898_v6  ;;  %v3992_v6 = vld [vmem:[#allocation4 + $0xe0] ss:$16 sps:$4 sm:$0xff]  }
  0xe7   :  { %1570 = vmatpush1.bf16.msra.mxu0 %v3901_v8  ;;  %1742 = vmatpush1.bf16.msra.mxu1 %v3904_v9  ;;  %v4000_v8 = vld [vmem:[#allocation4 + $0x104] ss:$16 sps:$4 sm:$0xff]   ;;  %v4003_v9 = vld [vmem:[#allocation4 + $0x10c] ss:$16 sps:$4 sm:$0xff]  }
  0xe8   :  { %1571 = vmatprep.subr.bf16.mxu0 %v3909_v10  ;;  %1743 = vmatprep.subr.bf16.mxu1 %v3912_v11  ;;  %v3998_v10 = vld [vmem:[#allocation4 + $0x100] ss:$16 sps:$4 sm:$0xff]   ;;  %v4001_v11 = vld [vmem:[#allocation4 + $0x108] ss:$16 sps:$4 sm:$0xff]  }
  0xe9   :  { %1601 = vmatprep.mubr.bf16.mxu0 %v4226_v18  ;;  %1773 = vmatprep.mubr.bf16.mxu1 %v4226_v18  ;;  %v4010_v18 = vld [vmem:[#allocation4 + $0x140] ss:$16 sps:$4 sm:$0xff]  }
  0xeb   :  { %1572 = vmatpush1.bf16.msra.mxu0 %v3907_v12  ;;  %1744 = vmatpush1.bf16.msra.mxu1 %v3910_v13  ;;  %v4006_v12 = vld [vmem:[#allocation4 + $0x124] ss:$16 sps:$4 sm:$0xff]   ;;  %v4009_v13 = vld [vmem:[#allocation4 + $0x12c] ss:$16 sps:$4 sm:$0xff]  }
  0xec   :  { %1573 = vmatprep.subr.bf16.mxu0 %v3915_v14  ;;  %1745 = vmatprep.subr.bf16.mxu1 %v3918_v15  ;;  %v4004_v14 = vld [vmem:[#allocation4 + $0x120] ss:$16 sps:$4 sm:$0xff]   ;;  %v4007_v15 = vld [vmem:[#allocation4 + $0x128] ss:$16 sps:$4 sm:$0xff]  }
  0xef   :  { %1574 = vmatpush1.bf16.msra.mxu0 %v3913_v16  ;;  %1746 = vmatpush1.bf16.msra.mxu1 %v3916_v17  ;;  %v4012_v16 = vld [vmem:[#allocation4 + $0x144] ss:$16 sps:$4 sm:$0xff]   ;;  %v4015_v17 = vld [vmem:[#allocation4 + $0x14c] ss:$16 sps:$4 sm:$0xff]  }
  0xf0   :  { %1575 = vmatprep.subr.bf16.mxu0 %v3921_v19  ;;  %1747 = vmatprep.subr.bf16.mxu1 %v3924_v20  ;;  %v4013_v19 = vld [vmem:[#allocation4 + $0x148] ss:$16 sps:$4 sm:$0xff]   ;;  %v4018_v20 = vld [vmem:[#allocation4 + $0x164] ss:$16 sps:$4 sm:$0xff]  }
  0xf3   :  { %1576 = vmatpush1.bf16.msra.mxu0 %v3919_v21  ;;  %1748 = vmatpush1.bf16.msra.mxu1 %v3922_v22  ;;  %v4021_v21 = vld [vmem:[#allocation4 + $0x16c] ss:$16 sps:$4 sm:$0xff]   ;;  %v4016_v22 = vld [vmem:[#allocation4 + $0x160] ss:$16 sps:$4 sm:$0xff]  }
  0xf4   :  { %1577 = vmatprep.subr.bf16.mxu0 %v3927_v23  ;;  %1749 = vmatprep.subr.bf16.mxu1 %v3930_v24  ;;  %v4019_v23 = vld [vmem:[#allocation4 + $0x168] ss:$16 sps:$4 sm:$0xff]   ;;  %v4024_v24 = vld [vmem:[#allocation4 + $0x184] ss:$16 sps:$4 sm:$0xff]  }
  0xf7   :  { %1578 = vmatpush1.bf16.msra.mxu0 %v3925_v25  ;;  %1750 = vmatpush1.bf16.msra.mxu1 %v3928_v26  ;;  %v4027_v25 = vld [vmem:[#allocation4 + $0x18c] ss:$16 sps:$4 sm:$0xff]   ;;  %v4022_v26 = vld [vmem:[#allocation4 + $0x180] ss:$16 sps:$4 sm:$0xff]  }
  0xf8   :  { %1579 = vmatprep.subr.bf16.mxu0 %v3933_v27  ;;  %1751 = vmatprep.subr.bf16.mxu1 %v3936_v28  ;;  %v4025_v27 = vld [vmem:[#allocation4 + $0x188] ss:$16 sps:$4 sm:$0xff]   ;;  %v4030_v28 = vld [vmem:[#allocation4 + $0x1a4] ss:$16 sps:$4 sm:$0xff]  }
  0xfb   :  { %1580 = vmatpush1.bf16.msra.mxu0 %v3931_v29  ;;  %1752 = vmatpush1.bf16.msra.mxu1 %v3934_v30  ;;  %v4033_v29 = vld [vmem:[#allocation4 + $0x1ac] ss:$16 sps:$4 sm:$0xff]   ;;  %v4028_v30 = vld [vmem:[#allocation4 + $0x1a0] ss:$16 sps:$4 sm:$0xff]  }
  0xfc   :  { %1581 = vmatprep.subr.bf16.mxu0 %v3939_v31  ;;  %1753 = vmatprep.subr.bf16.mxu1 %v3942_v32  ;;  %v4031_v31 = vld [vmem:[#allocation4 + $0x1a8] ss:$16 sps:$4 sm:$0xff]   ;;  %v4036_v32 = vld [vmem:[#allocation4 + $0x1c4] ss:$16 sps:$4 sm:$0xff]  }
  0xff   :  { %1582 = vmatpush1.bf16.msra.mxu0 %v3937_v33  ;;  %1754 = vmatpush1.bf16.msra.mxu1 %v3940_v34  ;;  %v4039_v33 = vld [vmem:[#allocation4 + $0x1cc] ss:$16 sps:$4 sm:$0xff]   ;;  %v4034_v34 = vld [vmem:[#allocation4 + $0x1c0] ss:$16 sps:$4 sm:$0xff]  }
 0x100   :  { %1583 = vmatprep.subr.bf16.mxu0 %v3945_v35  ;;  %1755 = vmatprep.subr.bf16.mxu1 %v3948_v36  ;;  %v4037_v35 = vld [vmem:[#allocation4 + $0x1c8] ss:$16 sps:$4 sm:$0xff]   ;;  %v4042_v36 = vld [vmem:[#allocation4 + $0x1e4] ss:$16 sps:$4 sm:$0xff]  }
 0x103   :  { %1584 = vmatpush1.bf16.msra.mxu0 %v3943_v37  ;;  %1756 = vmatpush1.bf16.msra.mxu1 %v3946_v38  ;;  %v4045_v37 = vld [vmem:[#allocation4 + $0x1ec] ss:$16 sps:$4 sm:$0xff]   ;;  %v4040_v38 = vld [vmem:[#allocation4 + $0x1e0] ss:$16 sps:$4 sm:$0xff]  }
 0x104   :  { %2586 = vmatprep.subr.bf16.mxu0 %v3952_v39  ;;  %2672 = vmatprep.subr.bf16.mxu1 %v3955_v40  ;;  %v4043_v39 = vld [vmem:[#allocation4 + $0x1e8] ss:$16 sps:$4 sm:$0xff]   ;;  %v4048_v40 = vld [vmem:[#allocation4 + $0x204] ss:$16 sps:$4 sm:$0xff]  }
 0x106   :  { %1602 = vmatmul.mubr.bf16.vlgmr.msra.gmra.mrb[0].mxu0 %v3949_v41  ;;  %1774 = vmatmul.mubr.bf16.vlgmr.msra.gmra.mrb[0].mxu1 %v3949_v41  ;;  %v4051_v41 = vld [vmem:[#allocation4 + $0x20c] ss:$16 sps:$4 sm:$0xff]  }
 0x107   :  { %2587 = vmatpush1.bf16.msra.mxu0 %v3950_v42  ;;  %2673 = vmatpush1.bf16.msra.mxu1 %v3953_v43 }
 0x108   :  { %2588 = vmatprep.subr.bf16.mxu0 %v3958_v44  ;;  %2674 = vmatprep.subr.bf16.mxu1 %v3961_v45 }
 0x10b   :  { %2589 = vmatpush1.bf16.msra.mxu0 %v3956_v46  ;;  %2675 = vmatpush1.bf16.msra.mxu1 %v3959_v47 }
 0x10c   :  { %2590 = vmatprep.subr.bf16.mxu0 %v3964_v48  ;;  %2676 = vmatprep.subr.bf16.mxu1 %v3967_v49 }
 0x10f   :  { %2591 = vmatpush1.bf16.msra.mxu0 %v3962_v50  ;;  %2677 = vmatpush1.bf16.msra.mxu1 %v3965_v51 }
 0x110   :  { %2592 = vmatprep.subr.bf16.mxu0 %v3970_v52  ;;  %2678 = vmatprep.subr.bf16.mxu1 %v3973_v53 }
 0x113   :  { %2593 = vmatpush1.bf16.msra.mxu0 %v3968_v54  ;;  %2679 = vmatpush1.bf16.msra.mxu1 %v3971_v55 }
 0x114   :  { %2594 = vmatprep.subr.bf16.mxu0 %v3976_v56  ;;  %2680 = vmatprep.subr.bf16.mxu1 %v3979_v57 }
 0x117   :  { %2595 = vmatpush1.bf16.msra.mxu0 %v3974_v58  ;;  %2681 = vmatpush1.bf16.msra.mxu1 %v3977_v59 }
 0x118   :  { %2596 = vmatprep.subr.bf16.mxu0 %v3982_v60  ;;  %2682 = vmatprep.subr.bf16.mxu1 %v3985_v61 }
 0x11b   :  { %2597 = vmatpush1.bf16.msra.mxu0 %v3980_v62  ;;  %2683 = vmatpush1.bf16.msra.mxu1 %v3983_v63  ;;  %v4046_v62 = vld [vmem:[#allocation4 + $0x200] ss:$16 sps:$4 sm:$0xff]   ;;  %v4049_v63 = vld [vmem:[#allocation4 + $0x208] ss:$16 sps:$4 sm:$0xff]  }
 0x11c   :  { %2598 = vmatprep.subr.bf16.mxu0 %v3988_v0  ;;  %2684 = vmatprep.subr.bf16.mxu1 %v3991_v1  ;;  %v4054_v0 = vld [vmem:[#allocation4 + $0x224] ss:$16 sps:$4 sm:$0xff]   ;;  %v4057_v1 = vld [vmem:[#allocation4 + $0x22c] ss:$16 sps:$4 sm:$0xff]  }
 0x11f   :  { %2599 = vmatpush1.bf16.msra.mxu0 %v3986_v2  ;;  %2685 = vmatpush1.bf16.msra.mxu1 %v3989_v3  ;;  %v4052_v2 = vld [vmem:[#allocation4 + $0x220] ss:$16 sps:$4 sm:$0xff]   ;;  %v4055_v3 = vld [vmem:[#allocation4 + $0x228] ss:$16 sps:$4 sm:$0xff]  }
 0x120   :  { %2600 = vmatprep.subr.bf16.mxu0 %v3994_v4  ;;  %2686 = vmatprep.subr.bf16.mxu1 %v3997_v5  ;;  %v4060_v4 = vld [vmem:[#allocation4 + $0x244] ss:$16 sps:$4 sm:$0xff]   ;;  %v4063_v5 = vld [vmem:[#allocation4 + $0x24c] ss:$16 sps:$4 sm:$0xff]  }
 0x123   :  { %2601 = vmatpush1.bf16.msra.mxu0 %v3992_v6  ;;  %2687 = vmatpush1.bf16.msra.mxu1 %v3995_v7  ;;  %v4058_v6 = vld [vmem:[#allocation4 + $0x240] ss:$16 sps:$4 sm:$0xff]   ;;  %v4061_v7 = vld [vmem:[#allocation4 + $0x248] ss:$16 sps:$4 sm:$0xff]  }
 0x124   :  { %2602 = vmatprep.subr.bf16.mxu0 %v4000_v8  ;;  %2688 = vmatprep.subr.bf16.mxu1 %v4003_v9  ;;  %v4066_v8 = vld [vmem:[#allocation4 + $0x264] ss:$16 sps:$4 sm:$0xff]   ;;  %v4069_v9 = vld [vmem:[#allocation4 + $0x26c] ss:$16 sps:$4 sm:$0xff]  }
 0x127   :  { %2603 = vmatpush1.bf16.msra.mxu0 %v3998_v10  ;;  %2689 = vmatpush1.bf16.msra.mxu1 %v4001_v11  ;;  %v4064_v10 = vld [vmem:[#allocation4 + $0x260] ss:$16 sps:$4 sm:$0xff]   ;;  %v4067_v11 = vld [vmem:[#allocation4 + $0x268] ss:$16 sps:$4 sm:$0xff]  }
 0x128   :  { %2604 = vmatprep.subr.bf16.mxu0 %v4006_v12  ;;  %2690 = vmatprep.subr.bf16.mxu1 %v4009_v13  ;;  %v4072_v12 = vld [vmem:[#allocation4 + $0x284] ss:$16 sps:$4 sm:$0xff]   ;;  %v4075_v13 = vld [vmem:[#allocation4 + $0x28c] ss:$16 sps:$4 sm:$0xff]  }
 0x12b   :  { %2605 = vmatpush1.bf16.msra.mxu0 %v4004_v14  ;;  %2691 = vmatpush1.bf16.msra.mxu1 %v4007_v15  ;;  %v4070_v14 = vld [vmem:[#allocation4 + $0x280] ss:$16 sps:$4 sm:$0xff]   ;;  %v4073_v15 = vld [vmem:[#allocation4 + $0x288] ss:$16 sps:$4 sm:$0xff]  }
 0x12c   :  { %2606 = vmatprep.subr.bf16.mxu0 %v4012_v16  ;;  %2692 = vmatprep.subr.bf16.mxu1 %v4015_v17  ;;  %v4078_v16 = vld [vmem:[#allocation4 + $0x2a4] ss:$16 sps:$4 sm:$0xff]   ;;  %v4081_v17 = vld [vmem:[#allocation4 + $0x2ac] ss:$16 sps:$4 sm:$0xff]  }
 0x12f   :  { %2607 = vmatpush1.bf16.msra.mxu0 %v4010_v18  ;;  %2693 = vmatpush1.bf16.msra.mxu1 %v4013_v19  ;;  %v4076_v18 = vld [vmem:[#allocation4 + $0x2a0] ss:$16 sps:$4 sm:$0xff]   ;;  %v4079_v19 = vld [vmem:[#allocation4 + $0x2a8] ss:$16 sps:$4 sm:$0xff]  }
 0x130   :  { %2608 = vmatprep.subr.bf16.mxu0 %v4018_v20  ;;  %2694 = vmatprep.subr.bf16.mxu1 %v4021_v21  ;;  %v4084_v20 = vld [vmem:[#allocation4 + $0x2c4] ss:$16 sps:$4 sm:$0xff]   ;;  %v4087_v21 = vld [vmem:[#allocation4 + $0x2cc] ss:$16 sps:$4 sm:$0xff]  }
 0x133   :  { %2609 = vmatpush1.bf16.msra.mxu0 %v4016_v22  ;;  %2695 = vmatpush1.bf16.msra.mxu1 %v4019_v23  ;;  %v4082_v22 = vld [vmem:[#allocation4 + $0x2c0] ss:$16 sps:$4 sm:$0xff]   ;;  %v4085_v23 = vld [vmem:[#allocation4 + $0x2c8] ss:$16 sps:$4 sm:$0xff]  }
 0x134   :  { %2610 = vmatprep.subr.bf16.mxu0 %v4024_v24  ;;  %2696 = vmatprep.subr.bf16.mxu1 %v4027_v25  ;;  %v4090_v24 = vld [vmem:[#allocation4 + $0x2e4] ss:$16 sps:$4 sm:$0xff]   ;;  %v4093_v25 = vld [vmem:[#allocation4 + $0x2ec] ss:$16 sps:$4 sm:$0xff]  }
 0x137   :  { %2611 = vmatpush1.bf16.msra.mxu0 %v4022_v26  ;;  %2697 = vmatpush1.bf16.msra.mxu1 %v4025_v27  ;;  %v4088_v26 = vld [vmem:[#allocation4 + $0x2e0] ss:$16 sps:$4 sm:$0xff]   ;;  %v4091_v27 = vld [vmem:[#allocation4 + $0x2e8] ss:$16 sps:$4 sm:$0xff]  }
 0x138   :  { %2612 = vmatprep.subr.bf16.mxu0 %v4030_v28  ;;  %2698 = vmatprep.subr.bf16.mxu1 %v4033_v29  ;;  %v4096_v28 = vld [vmem:[#allocation4 + $0x304] ss:$16 sps:$4 sm:$0xff]   ;;  %v4099_v29 = vld [vmem:[#allocation4 + $0x30c] ss:$16 sps:$4 sm:$0xff]  }
 0x13b   :  { %2613 = vmatpush1.bf16.msra.mxu0 %v4028_v30  ;;  %2699 = vmatpush1.bf16.msra.mxu1 %v4031_v31  ;;  %v4094_v30 = vld [vmem:[#allocation4 + $0x300] ss:$16 sps:$4 sm:$0xff]   ;;  %v4097_v31 = vld [vmem:[#allocation4 + $0x308] ss:$16 sps:$4 sm:$0xff]  }
 0x13c   :  { %2614 = vmatprep.subr.bf16.mxu0 %v4036_v32  ;;  %2700 = vmatprep.subr.bf16.mxu1 %v4039_v33  ;;  %v4102_v32 = vld [vmem:[#allocation4 + $0x324] ss:$16 sps:$4 sm:$0xff]   ;;  %v4105_v33 = vld [vmem:[#allocation4 + $0x32c] ss:$16 sps:$4 sm:$0xff]  }
 0x13f   :  { %2615 = vmatpush1.bf16.msra.mxu0 %v4034_v34  ;;  %2701 = vmatpush1.bf16.msra.mxu1 %v4037_v35  ;;  %v4100_v34 = vld [vmem:[#allocation4 + $0x320] ss:$16 sps:$4 sm:$0xff]   ;;  %v4103_v35 = vld [vmem:[#allocation4 + $0x328] ss:$16 sps:$4 sm:$0xff]  }
 0x140   :  { %2616 = vmatprep.subr.bf16.mxu0 %v4042_v36  ;;  %2702 = vmatprep.subr.bf16.mxu1 %v4045_v37  ;;  %v4108_v36 = vld [vmem:[#allocation4 + $0x344] ss:$16 sps:$4 sm:$0xff]   ;;  %v4111_v37 = vld [vmem:[#allocation4 + $0x34c] ss:$16 sps:$4 sm:$0xff]  }
 0x143   :  { %2617 = vmatpush1.bf16.msra.mxu0 %v4040_v38  ;;  %2703 = vmatpush1.bf16.msra.mxu1 %v4043_v39  ;;  %v4106_v38 = vld [vmem:[#allocation4 + $0x340] ss:$16 sps:$4 sm:$0xff]   ;;  %v4109_v39 = vld [vmem:[#allocation4 + $0x348] ss:$16 sps:$4 sm:$0xff]  }
 0x144   :  { %2629 = vmatprep.subr.bf16.mxu0 %v4048_v40  ;;  %2715 = vmatprep.subr.bf16.mxu1 %v4051_v41  ;;  %v4114_v40 = vld [vmem:[#allocation4 + $0x364] ss:$16 sps:$4 sm:$0xff]   ;;  %v4117_v41 = vld [vmem:[#allocation4 + $0x36c] ss:$16 sps:$4 sm:$0xff]  }
 0x1d9   :  { %v1603_v42 = vpop.f32.mrb[0].mxu0  ;;  %v1775_v43 = vpop.f32.mrb[0].mxu1 }
 0x1da   :  { %v1605_v44 = vpop.f32.mrb[1].mxu0  ;;  %v1777_v45 = vpop.f32.mrb[1].mxu1  ;;  %v1784_v48 = vmax.f32 %v1603_v42, 0.0  ;;  %v1786_v49 = vmax.f32 %v1775_v43, 0.0  ;;  %v4112_v42 = vld [vmem:[#allocation4 + $0x360] ss:$16 sps:$4 sm:$0xff]  }
 0x1db   :  { %v1607_v46 = vpop.f32.mrb[2].mxu0  ;;  %v1779_v47 = vpop.f32.mrb[2].mxu1  ;;  %v1785_v54 = vmax.f32 %v1605_v44, 0.0  ;;  %v1787_v55 = vmax.f32 %v1777_v45, 0.0  ;;  %v4115_v43 = vld [vmem:[#allocation4 + $0x368] ss:$16 sps:$4 sm:$0xff]  }
 0x1dc   :  { %v1788_v50 = vmax.f32 %v1607_v46, 0.0  ;;  %v1790_v51 = vmax.f32 %v1779_v47, 0.0  ;;  %v1609_v52 = vpop.f32.mrb[3].mxu0  ;;  %v1781_v53 = vpop.f32.mrb[3].mxu1  ;;  %v4120_v44 = vld [vmem:[#allocation4 + $0x384] ss:$16 sps:$4 sm:$0xff]  }
 0x1dd   :  { %v1789_v56 = vmax.f32 %v1609_v52, 0.0  ;;  %v1791_v57 = vmax.f32 %v1781_v53, 0.0  ;;  %v4123_v45 = vld [vmem:[#allocation4 + $0x38c] ss:$16 sps:$4 sm:$0xff]   ;;  %v4118_v46 = vld [vmem:[#allocation4 + $0x380] ss:$16 sps:$4 sm:$0xff]  }
 0x1de   :  { %v1792_v58 = vpack.c.bf16 %v1788_v50, %v1784_v48  ;;  %v4307_v59 = vpack.c.bf16 %v1790_v51, %v1786_v49  ;;  %v4121_v47 = vld [vmem:[#allocation4 + $0x388] ss:$16 sps:$4 sm:$0xff]   ;;  %v4126_v48 = vld [vmem:[#allocation4 + $0x3a4] ss:$16 sps:$4 sm:$0xff]   ;;  %v4129_v49 = vld [vmem:[#allocation4 + $0x3ac] ss:$16 sps:$4 sm:$0xff]  }
 0x1df   :  { %v1793_v60 = vpack.c.bf16 %v1789_v56, %v1785_v54  ;;  %v1795_v61 = vpack.c.bf16 %v1791_v57, %v1787_v55  ;;  %v4124_v50 = vld [vmem:[#allocation4 + $0x3a0] ss:$16 sps:$4 sm:$0xff]   ;;  %v4127_v51 = vld [vmem:[#allocation4 + $0x3a8] ss:$16 sps:$4 sm:$0xff]   ;;  %v4132_v52 = vld [vmem:[#allocation4 + $0x3c4] ss:$16 sps:$4 sm:$0xff]  }
 0x1e0   :  { %v4135_v53 = vld [vmem:[#allocation4 + $0x3cc] ss:$16 sps:$4 sm:$0xff]   ;;  %v4130_v54 = vld [vmem:[#allocation4 + $0x3c0] ss:$16 sps:$4 sm:$0xff]   ;;  %v4133_v55 = vld [vmem:[#allocation4 + $0x3c8] ss:$16 sps:$4 sm:$0xff]  }
 0x1e1   :  { %2618 = vmatprep.mubr.bf16.mxu0 %v1793_v60  ;;  %2704 = vmatprep.mubr.bf16.mxu1 %v1793_v60  ;;  %v4138_v56 = vld [vmem:[#allocation4 + $0x3e4] ss:$16 sps:$4 sm:$0xff]   ;;  %v4141_v57 = vld [vmem:[#allocation4 + $0x3ec] ss:$16 sps:$4 sm:$0xff]   ;;  %v4139_v60 = vld [vmem:[#allocation4 + $0x3e8] ss:$16 sps:$4 sm:$0xff]  }
 0x1e2   :  { %2619 = vmatmul.mubr.bf16.vlgmr.msra.gmra.mrb[4].mxu0 %v1792_v58  ;;  %2705 = vmatmul.mubr.bf16.vlgmr.msra.gmra.mrb[4].mxu1 %v1792_v58  ;;  %v4136_v58 = vld [vmem:[#allocation4 + $0x3e0] ss:$16 sps:$4 sm:$0xff]  }
 0x1e3   :  { %2630 = vmatpush1.bf16.msra.mxu0 %v4046_v62  ;;  %2716 = vmatpush1.bf16.msra.mxu1 %v4049_v63  ;;  %v4143_v62 = vld [vmem:[%s4423_s4 + $0xc0] sm:$0xff]  }
 0x1e4   :  { %2661 = vmatprep.mubr.bf16.mxu0 %v1795_v61  ;;  %2747 = vmatprep.mubr.bf16.mxu1 %v1795_v61  ;;  %v4142_v61 = vld [vmem:[%s4423_s4 + $0x40] sm:$0xff]  }
 0x1e5   :  { %2631 = vmatprep.subr.bf16.mxu0 %v4054_v0  ;;  %2717 = vmatprep.subr.bf16.mxu1 %v4057_v1  ;;  %v4144_v63 = vld [vmem:[%s4423_s4] sm:$0xff]   ;;  %v4146_v1 = vld [vmem:[%s4423_s4 + $0x48] sm:$0xff]  }
 0x1e6   :  { %v4145_v0 = vld [vmem:[%s4423_s4 + $0x80] sm:$0xff]  }
 0x1e7   :  { %2632 = vmatpush1.bf16.msra.mxu0 %v4052_v2  ;;  %2718 = vmatpush1.bf16.msra.mxu1 %v4055_v3  ;;  %v4147_v2 = vld [vmem:[%s4423_s4 + $0xc8] sm:$0xff]  }
 0x1e8   :  { %2633 = vmatprep.subr.bf16.mxu0 %v4060_v4  ;;  %2719 = vmatprep.subr.bf16.mxu1 %v4063_v5  ;;  %v4148_v3 = vld [vmem:[%s4423_s4 + $0x8] sm:$0xff]   ;;  %v4150_v5 = vld [vmem:[%s4423_s4 + $0x50] sm:$0xff]  }
 0x1e9   :  { %v4149_v4 = vld [vmem:[%s4423_s4 + $0x88] sm:$0xff]  }
 0x1eb   :  { %2634 = vmatpush1.bf16.msra.mxu0 %v4058_v6  ;;  %2720 = vmatpush1.bf16.msra.mxu1 %v4061_v7  ;;  %v4152_v6 = vld [vmem:[%s4423_s4 + $0x10] sm:$0xff]  }
 0x1ec   :  { %2635 = vmatprep.subr.bf16.mxu0 %v4066_v8  ;;  %2721 = vmatprep.subr.bf16.mxu1 %v4069_v9  ;;  %v4153_v7 = vld [vmem:[%s4423_s4 + $0x90] sm:$0xff]   ;;  %v4154_v8 = vld [vmem:[%s4423_s4 + $0x58] sm:$0xff]  }
 0x1ed   :  { %v4155_v9 = vld [vmem:[%s4423_s4 + $0xd8] sm:$0xff]  }
 0x1ef   :  { %2636 = vmatpush1.bf16.msra.mxu0 %v4064_v10  ;;  %2722 = vmatpush1.bf16.msra.mxu1 %v4067_v11  ;;  %v4156_v10 = vld [vmem:[%s4423_s4 + $0x18] sm:$0xff]  }
 0x1f0   :  { %2637 = vmatprep.subr.bf16.mxu0 %v4072_v12  ;;  %2723 = vmatprep.subr.bf16.mxu1 %v4075_v13  ;;  %v4157_v11 = vld [vmem:[%s4423_s4 + $0x98] sm:$0xff]   ;;  %v4158_v12 = vld [vmem:[%s4423_s4 + $0x60] sm:$0xff]  }
 0x1f1   :  { %v4159_v13 = vld [vmem:[%s4423_s4 + $0xe0] sm:$0xff]  }
 0x1f3   :  { %2638 = vmatpush1.bf16.msra.mxu0 %v4070_v14  ;;  %2724 = vmatpush1.bf16.msra.mxu1 %v4073_v15  ;;  %v4160_v14 = vld [vmem:[%s4423_s4 + $0x20] sm:$0xff]  }
 0x1f4   :  { %2639 = vmatprep.subr.bf16.mxu0 %v4078_v16  ;;  %2725 = vmatprep.subr.bf16.mxu1 %v4081_v17  ;;  %v4161_v15 = vld [vmem:[%s4423_s4 + $0xa0] sm:$0xff]   ;;  %v4162_v16 = vld [vmem:[%s4423_s4 + $0x68] sm:$0xff]  }
 0x1f5   :  { %v4163_v17 = vld [vmem:[%s4423_s4 + $0xe8] sm:$0xff]  }
 0x1f7   :  { %2640 = vmatpush1.bf16.msra.mxu0 %v4076_v18  ;;  %2726 = vmatpush1.bf16.msra.mxu1 %v4079_v19  ;;  %v4164_v18 = vld [vmem:[%s4423_s4 + $0x28] sm:$0xff]  }
 0x1f8   :  { %2641 = vmatprep.subr.bf16.mxu0 %v4084_v20  ;;  %2727 = vmatprep.subr.bf16.mxu1 %v4087_v21  ;;  %v4165_v19 = vld [vmem:[%s4423_s4 + $0xa8] sm:$0xff]   ;;  %v4166_v20 = vld [vmem:[%s4423_s4 + $0x70] sm:$0xff]  }
 0x1f9   :  { %v4167_v21 = vld [vmem:[%s4423_s4 + $0xf0] sm:$0xff]  }
 0x1fb   :  { %2642 = vmatpush1.bf16.msra.mxu0 %v4082_v22  ;;  %2728 = vmatpush1.bf16.msra.mxu1 %v4085_v23  ;;  %v4168_v22 = vld [vmem:[%s4423_s4 + $0x30] sm:$0xff]  }
 0x1fc   :  { %2643 = vmatprep.subr.bf16.mxu0 %v4090_v24  ;;  %2729 = vmatprep.subr.bf16.mxu1 %v4093_v25  ;;  %v4169_v23 = vld [vmem:[%s4423_s4 + $0xb0] sm:$0xff]   ;;  %v4170_v24 = vld [vmem:[%s4423_s4 + $0x78] sm:$0xff]  }
 0x1fd   :  { %v4171_v25 = vld [vmem:[%s4423_s4 + $0xf8] sm:$0xff]  }
 0x1ff   :  { %2644 = vmatpush1.bf16.msra.mxu0 %v4088_v26  ;;  %2730 = vmatpush1.bf16.msra.mxu1 %v4091_v27  ;;  %v4172_v26 = vld [vmem:[%s4423_s4 + $0x38] sm:$0xff]  }
 0x200   :  { %2645 = vmatprep.subr.bf16.mxu0 %v4096_v28  ;;  %2731 = vmatprep.subr.bf16.mxu1 %v4099_v29  ;;  %v4173_v27 = vld [vmem:[%s4423_s4 + $0xb8] sm:$0xff]   ;;  %v1926_v28 = vlaneseq }
 0x202   :  { %v1927_v29 = vshrl.u32 %v1926_v28, 7 }
 0x203   :  { %2646 = vmatpush1.bf16.msra.mxu0 %v4094_v30  ;;  %2732 = vmatpush1.bf16.msra.mxu1 %v4097_v31 }
 0x204   :  { %2647 = vmatprep.subr.bf16.mxu0 %v4102_v32  ;;  %2733 = vmatprep.subr.bf16.mxu1 %v4105_v33  ;;  %v1928_v30 = vsub.s32 0, %v1927_v29  ;;  %v1936_v31 = vsub.s32 2, %v1927_v29  ;;  %v1924_v32 = vld [vmem:[%s4422_s3] sm:$0xf]  ;;  %v1932_v33 = vsub.s32 1, %v1927_v29 }
 0x207   :  { %2648 = vmatpush1.bf16.msra.mxu0 %v4100_v34  ;;  %2734 = vmatpush1.bf16.msra.mxu1 %v4103_v35  ;;  %v1940_v34 = vsub.s32 3, %v1927_v29  ;;  %v1929_v35 = vrot.slane %v1924_v32, %v1928_v30 }
 0x208   :  { %2649 = vmatprep.subr.bf16.mxu0 %v4108_v36  ;;  %2735 = vmatprep.subr.bf16.mxu1 %v4111_v37  ;;  %v1937_v36 = vrot.slane %v1924_v32, %v1936_v31  ;;  %v1933_v37 = vrot.slane %v1924_v32, %v1932_v33 }
 0x20b   :  { %2650 = vmatpush1.bf16.msra.mxu0 %v4106_v38  ;;  %2736 = vmatpush1.bf16.msra.mxu1 %v4109_v39  ;;  %v1941_v38 = vrot.slane %v1924_v32, %v1940_v34 }
 0x20c   :  { %2651 = vmatprep.subr.bf16.mxu0 %v4114_v40  ;;  %2737 = vmatprep.subr.bf16.mxu1 %v4117_v41 }
 0x20f   :  { %2652 = vmatpush1.bf16.msra.mxu0 %v4112_v42  ;;  %2738 = vmatpush1.bf16.msra.mxu1 %v4115_v43 }
 0x210   :  { %2653 = vmatprep.subr.bf16.mxu0 %v4120_v44  ;;  %2739 = vmatprep.subr.bf16.mxu1 %v4123_v45 }
 0x213   :  { %2654 = vmatpush1.bf16.msra.mxu0 %v4118_v46  ;;  %2740 = vmatpush1.bf16.msra.mxu1 %v4121_v47 }
 0x214   :  { %2655 = vmatprep.subr.bf16.mxu0 %v4126_v48  ;;  %2741 = vmatprep.subr.bf16.mxu1 %v4129_v49 }
 0x217   :  { %2656 = vmatpush1.bf16.msra.mxu0 %v4124_v50  ;;  %2742 = vmatpush1.bf16.msra.mxu1 %v4127_v51 }
 0x218   :  { %2657 = vmatprep.subr.bf16.mxu0 %v4132_v52  ;;  %2743 = vmatprep.subr.bf16.mxu1 %v4135_v53 }
 0x21b   :  { %2658 = vmatpush1.bf16.msra.mxu0 %v4130_v54  ;;  %2744 = vmatpush1.bf16.msra.mxu1 %v4133_v55 }
 0x21c   :  { %2659 = vmatprep.subr.bf16.mxu0 %v4138_v56  ;;  %2745 = vmatprep.subr.bf16.mxu1 %v4141_v57 }
 0x21f   :  { %2660 = vmatpush1.bf16.msra.mxu0 %v4136_v58  ;;  %2746 = vmatpush1.bf16.msra.mxu1 %v4139_v60 }
 0x220   :  { %3515 = vmatprep.subr.bf16.mxu0 %v4142_v61  ;;  %3537 = vmatprep.subr.bf16.mxu1 %v4143_v62 }
 0x222   :  { %2662 = vmatmul.mubr.bf16.vlgmr.msra.gmra.mrb[4].mxu0 %v4307_v59  ;;  %2748 = vmatmul.mubr.bf16.vlgmr.msra.gmra.mrb[4].mxu1 %v4307_v59  ;;  %v4151_v59 = vld [vmem:[%s4423_s4 + $0xd0] sm:$0xff]  }
 0x223   :  { %3516 = vmatpush3.bf16.msra.mxu0 %v4144_v63  ;;  %3538 = vmatpush3.bf16.msra.mxu1 %v4145_v0 }
 0x224   :  { %3517 = vmatprep.subr.bf16.mxu0 %v4146_v1  ;;  %3539 = vmatprep.subr.bf16.mxu1 %v4147_v2 }
 0x227   :  { %3518 = vmatpush3.bf16.msra.mxu0 %v4148_v3  ;;  %3540 = vmatpush3.bf16.msra.mxu1 %v4149_v4 }
 0x228   :  { %3519 = vmatprep.subr.bf16.mxu0 %v4150_v5  ;;  %3541 = vmatprep.subr.bf16.mxu1 %v4151_v59  ;;  %v3482_v59 = vld [vmem:[%s4424_s5] ss:$0 sm:$0xff] }
 0x22b   :  { %3520 = vmatpush3.bf16.msra.mxu0 %v4152_v6  ;;  %3542 = vmatpush3.bf16.msra.mxu1 %v4153_v7 }
 0x22c   :  { %3521 = vmatprep.subr.bf16.mxu0 %v4154_v8  ;;  %3543 = vmatprep.subr.bf16.mxu1 %v4155_v9 }
 0x22f   :  { %3522 = vmatpush3.bf16.msra.mxu0 %v4156_v10  ;;  %3544 = vmatpush3.bf16.msra.mxu1 %v4157_v11 }
 0x230   :  { %3523 = vmatprep.subr.bf16.mxu0 %v4158_v12  ;;  %3545 = vmatprep.subr.bf16.mxu1 %v4159_v13 }
 0x233   :  { %3524 = vmatpush3.bf16.msra.mxu0 %v4160_v14  ;;  %3546 = vmatpush3.bf16.msra.mxu1 %v4161_v15 }
 0x234   :  { %3525 = vmatprep.subr.bf16.mxu0 %v4162_v16  ;;  %3547 = vmatprep.subr.bf16.mxu1 %v4163_v17 }
 0x237   :  { %3526 = vmatpush3.bf16.msra.mxu0 %v4164_v18  ;;  %3548 = vmatpush3.bf16.msra.mxu1 %v4165_v19 }
 0x238   :  { %3527 = vmatprep.subr.bf16.mxu0 %v4166_v20  ;;  %3549 = vmatprep.subr.bf16.mxu1 %v4167_v21 }
 0x23b   :  { %3528 = vmatpush3.bf16.msra.mxu0 %v4168_v22  ;;  %3550 = vmatpush3.bf16.msra.mxu1 %v4169_v23 }
 0x23c   :  { %3529 = vmatprep.subr.bf16.mxu0 %v4170_v24  ;;  %3551 = vmatprep.subr.bf16.mxu1 %v4171_v25 }
 0x23f   :  { %3530 = vmatpush3.bf16.msra.mxu0 %v4172_v26  ;;  %3552 = vmatpush3.bf16.msra.mxu1 %v4173_v27 }
 0x2f5   :  { %v2663_v39 = vpop.f32.mrb[4].mxu0  ;;  %v2749_v40 = vpop.f32.mrb[4].mxu1 }
 0x2f6   :  { %v3559_v41 = vadd.f32 %v2663_v39, %v1929_v35  ;;  %v3563_v42 = vadd.f32 %v2749_v40, %v1937_v36  ;;  %v2665_v43 = vpop.f32.mrb[5].mxu0  ;;  %v2751_v44 = vpop.f32.mrb[5].mxu1 }
 0x2f7   :  { %v3560_v45 = vadd.f32 %v2665_v43, %v1933_v37  ;;  %v3564_v46 = vadd.f32 %v2751_v44, %v1941_v38  ;;  %v2667_v47 = vpop.f32.mrb[6].mxu0  ;;  %v2753_v48 = vpop.f32.mrb[6].mxu1 }
 0x2f8   :  { %v3561_v49 = vadd.f32 %v2667_v47, %v1929_v35  ;;  %v3565_v50 = vadd.f32 %v2753_v48, %v1937_v36  ;;  %v2669_v51 = vpop.f32.mrb[7].mxu0  ;;  %v2755_v52 = vpop.f32.mrb[7].mxu1  ;;  %v2758_v55 = vmax.f32 %v3559_v41, 0.0  ;;  %v2760_v56 = vmax.f32 %v3563_v42, 0.0 }
 0x2f9   :  { %v3562_v53 = vadd.f32 %v2669_v51, %v1933_v37  ;;  %v3566_v54 = vadd.f32 %v2755_v52, %v1941_v38  ;;  %v2759_v60 = vmax.f32 %v3560_v45, 0.0  ;;  %v2761_v61 = vmax.f32 %v3564_v46, 0.0 }
 0x2fa   :  { %v2762_v57 = vmax.f32 %v3561_v49, 0.0  ;;  %v2764_v58 = vmax.f32 %v3565_v50, 0.0 }
 0x2fb   :  { %v2763_v62 = vmax.f32 %v3562_v53, 0.0  ;;  %v2765_v63 = vmax.f32 %v3566_v54, 0.0 }
 0x2fc   :  { %v2766_v0 = vpack.c.bf16 %v2762_v57, %v2758_v55  ;;  %v2768_v1 = vpack.c.bf16 %v2764_v58, %v2760_v56 }
 0x2fd   :  { %v2767_v2 = vpack.c.bf16 %v2763_v62, %v2759_v60  ;;  %v2769_v3 = vpack.c.bf16 %v2765_v63, %v2761_v61 }
 0x2ff   :  { %3065 = vmatprep.mubr.bf16.mxu0 %v2767_v2  ;;  %3106 = vmatprep.mubr.bf16.mxu1 %v2769_v3 }
 0x300   :  { %3066 = vmatmul.mubr.bf16.vlgmr.msra.gmra.mrb[8].mxu0 %v2766_v0  ;;  %3107 = vmatmul.mubr.bf16.vlgmr.msra.gmra.mrb[8].mxu1 %v2768_v1 }
 0x3d3   :  { %v3531_v4 = vpop.f32.mrb[8].mxu0  ;;  %v3553_v5 = vpop.f32.mrb[8].mxu1 }
 0x3d4   :  { %v3532_v6 = vpop.f32.mrb[9].mxu0  ;;  %v3554_v7 = vpop.f32.mrb[9].mxu1 }
 0x3d5   :  { %v3533_v8 = vadd.f32 %v3532_v6, %v3531_v4  ;;  %v3555_v9 = vadd.f32 %v3554_v7, %v3553_v5  ;;  %v3534_v10 = vpop.f32.mrb[10].mxu0  ;;  %v3556_v11 = vpop.f32.mrb[10].mxu1 }
 0x3d6   :  { %v3535_v12 = vpop.f32.mrb[11].mxu0  ;;  %v3557_v13 = vpop.f32.mrb[11].mxu1 }
 0x3d7   :  { %v3068_v14 = vadd.f32 %v3533_v8, %v3482_v59  ;;  %v3536_v15 = vadd.f32 %v3535_v12, %v3534_v10  ;;  %v3558_v16 = vadd.f32 %v3557_v13, %v3556_v11 }
 0x3d9   :  { %v3109_v17 = vadd.f32 %v3555_v9, %v3068_v14  ;;  %v3071_v18 = vadd.f32 %v3536_v15, %v3482_v59 }
 0x3db   :  { %3115 = vst [vmem:[%s4425_s6] sm:$0xff] %v3109_v17  ;;  %v3112_v19 = vadd.f32 %v3558_v16, %v3071_v18 }
 0x3dd   :  { %3116 = vst [vmem:[%s4425_s6 + $0x8] sm:$0xff] %v3112_v19 }
 0x3de   :  { %3121 = vsyncpa [#allocation3], 1 }
 0x3df   :  { %3122 = vsyncpa [#allocation5], 1 }

</bundles_post_ra>
